<compile_context>
chip_gen: v6e
topology: v6e:2x2x1
jax: 0.10.0
libtpu: 0.0.40
codegen_flags: <defaults>
</compile_context>

<pallas_src>
import functools
import math

import jax
import jax.numpy as jnp
from jax import lax
from jax.experimental import pallas as pl
from jax.experimental.pallas import tpu as pltpu

_LANE = 128


def _round_up(n, m):
    return (n + m - 1) // m * m


# ----------------------------------------------------------------------------- kernel
def _self_attn_kernel(xq_ref, xk_ref, w_qk_ref, b_qk_ref, w_v_ref, b_v_ref,
                      w_out_ref, b_out_ref, out_ref,
                      q_sc, m_sc, l_sc, acc_sc):
    """One grid step = (batch b, query tile qi, key/value tile ki)."""
    ki = pl.program_id(2)
    nk = pl.num_programs(2)

    # ---- init per-(b, qi) state; project Q once and cache it (f_query == f_key) ----
    @pl.when(ki == 0)
    def _init():
        xq = xq_ref[0]                                               # (tq, Cin_p) bf16
        q = jnp.dot(xq, w_qk_ref[...], preferred_element_type=jnp.float32)
        q = jnp.maximum(q + b_qk_ref[...], 0.0)                      # BN folded; ReLU
        q_sc[...] = q.astype(jnp.bfloat16)
        m_sc[...] = jnp.full(m_sc.shape, -1e30, dtype=jnp.float32)
        l_sc[...] = jnp.zeros(l_sc.shape, dtype=jnp.float32)
        acc_sc[...] = jnp.zeros(acc_sc.shape, dtype=jnp.float32)

    # ---- project K and V for this kv tile (shared weights for K; bf16 MXU inputs) ----
    xk = xk_ref[0]                                                   # (tk, Cin_p) bf16
    k = jnp.dot(xk, w_qk_ref[...], preferred_element_type=jnp.float32)
    k = jnp.maximum(k + b_qk_ref[...], 0.0).astype(jnp.bfloat16)     # (tk, Ck_p)
    v = (jnp.dot(xk, w_v_ref[...], preferred_element_type=jnp.float32)
         + b_v_ref[...]).astype(jnp.bfloat16)                        # (tk, Cv_p)

    # ---- S = Q K^T: contract channel axis directly (no explicit transpose) ----
    s = lax.dot_general(q_sc[...], k, (((1,), (1,)), ((), ())),
                        preferred_element_type=jnp.float32)          # (tq, tk) f32
    # key_channels**-0.5 is pre-folded into the shared projection weights.

    # ---- online softmax update (f32 stats) ----
    m_prev = m_sc[...]
    m_new = jnp.maximum(m_prev, jnp.max(s, axis=-1, keepdims=True))
    alpha = jnp.exp(m_prev - m_new)
    p = jnp.exp(s - m_new)
    l_sc[...] = alpha * l_sc[...] + jnp.sum(p, axis=-1, keepdims=True)
    acc_sc[...] = alpha * acc_sc[...] + jnp.dot(
        p.astype(jnp.bfloat16), v, preferred_element_type=jnp.float32)
    m_sc[...] = m_new

    # ---- finalize: normalize, apply output 1x1 conv W, lane-dense store ----
    @pl.when(ki == nk - 1)
    def _finalize():
        inv_l = pl.reciprocal(l_sc[...], approx=True)                # EUP slot, ~free
        ctx = (acc_sc[...] * inv_l).astype(jnp.bfloat16)             # (tq, Cv_p)
        out = jnp.dot(ctx, w_out_ref[...], preferred_element_type=jnp.float32)
        out = out + b_out_ref[...]
        out_ref[0] = out.astype(out_ref.dtype)


# ----------------------------------------------------------------------------- wrapper
def self_attention_block(x, params, *, key_channels, value_channels,
                         out_channels, scale=1, bn_eps=1e-5, tile=128):
    """Forward pass of `_SelfAttentionBlock` (scale==1, eval-mode BN).  x: (N,C,H,W) f32."""
    if scale != 1:
        # TODO(synk): scale > 1 (MaxPool2d downsample + bilinear upsample) not implemented.
        raise NotImplementedError("only scale == 1 is supported")

    N, Cin, H, Wd = x.shape
    HW = H * Wd

    w_qk, b_qk = params["w_qk"], params["b_qk"]          # (Cin, Ck), (Ck,)
    gamma, beta = params["bn_gamma"], params["bn_beta"]  # (Ck,)
    mean, var = params["bn_mean"], params["bn_var"]      # (Ck,)
    w_v, b_v = params["w_v"], params["b_v"]              # (Cin, Cv), (Cv,)
    w_o, b_o = params["w_out"], params["b_out"]          # (Cv, Cout), (Cout,)

    # --- fold eval-mode BN and the key_channels**-0.5 scale into the shared Q/K proj ---
    inv_std = gamma * lax.rsqrt(var + bn_eps)
    w_qk_f = w_qk * inv_std[None, :]
    b_qk_f = (b_qk - mean) * inv_std + beta
    # query == key (shared nn.Sequential) -> fold sqrt(scale); it squares in Q @ K^T,
    # and ReLU commutes with the positive scalar.
    s_qk = float(key_channels) ** -0.25
    w_qk_f = w_qk_f * s_qk
    b_qk_f = b_qk_f * s_qk

    # --- pad every channel dim to a multiple of 128 (zero padding is exact) ---
    Cin_p = _round_up(Cin, _LANE)
    Ck_p = _round_up(key_channels, _LANE)
    Cv_p = _round_up(value_channels, _LANE)
    Co_p = _round_up(out_channels, _LANE)

    def pad2(a, r, c):
        return jnp.pad(a, ((0, r - a.shape[0]), (0, c - a.shape[1])))

    def pad_bias(a, c):
        return jnp.pad(a, (0, c - a.shape[0]))[None, :].astype(jnp.float32)

    w_qk_p = pad2(w_qk_f, Cin_p, Ck_p).astype(jnp.bfloat16)
    w_v_p = pad2(w_v, Cin_p, Cv_p).astype(jnp.bfloat16)
    w_o_p = pad2(w_o, Cv_p, Co_p).astype(jnp.bfloat16)
    b_qk_p = pad_bias(b_qk_f, Ck_p)
    b_v_p = pad_bias(b_v, Cv_p)
    b_o_p = pad_bias(b_o, Co_p)

    # --- NCHW -> (N, HW, Cin_p) tokens-by-channels, bf16 MXU inputs ---
    x_tok = x.reshape(N, Cin, HW).transpose(0, 2, 1)
    x_tok = jnp.pad(x_tok, ((0, 0), (0, 0), (0, Cin_p - Cin))).astype(jnp.bfloat16)

    # --- tiling of the HW x HW attention (flash style) ---
    if HW % tile == 0:
        tq = tk = tile
    else:
        # TODO(synk): mask/pad ragged HW; for now fall back to whole-row tiles.
        tq = tk = HW
    grid = (N, HW // tq, HW // tk)

    out_padded = pl.pallas_call(
        _self_attn_kernel,
        out_shape=jax.ShapeDtypeStruct((N, HW, Co_p), jnp.float32),
        grid_spec=pltpu.PrefetchScalarGridSpec(
            num_scalar_prefetch=0,
            grid=grid,
            in_specs=[
                # x tile for query rows / key-value rows (same array, two streams)
                pl.BlockSpec((1, tq, Cin_p), lambda b, i, k: (b, i, 0)),
                pl.BlockSpec((1, tk, Cin_p), lambda b, i, k: (b, k, 0)),
                # weights: constant index_map -> resident in VMEM, no re-DMA per step
                pl.BlockSpec((Cin_p, Ck_p), lambda b, i, k: (0, 0)),
                pl.BlockSpec((1, Ck_p), lambda b, i, k: (0, 0)),
                pl.BlockSpec((Cin_p, Cv_p), lambda b, i, k: (0, 0)),
                pl.BlockSpec((1, Cv_p), lambda b, i, k: (0, 0)),
                pl.BlockSpec((Cv_p, Co_p), lambda b, i, k: (0, 0)),
                pl.BlockSpec((1, Co_p), lambda b, i, k: (0, 0)),
            ],
            out_specs=pl.BlockSpec((1, tq, Co_p), lambda b, i, k: (b, i, 0)),
            scratch_shapes=[
                pltpu.VMEM((tq, Ck_p), jnp.bfloat16),   # cached Q tile
                pltpu.VMEM((tq, 1), jnp.float32),       # running max m
                pltpu.VMEM((tq, 1), jnp.float32),       # running denom l
                pltpu.VMEM((tq, Cv_p), jnp.float32),    # un-normalized context acc
            ],
        ),
        compiler_params=pltpu.CompilerParams(
            # batch & query-tile axes shard across v7x's 2 TCs; kv axis is a reduction.
            dimension_semantics=("parallel", "parallel", "arbitrary"),
            vmem_limit_bytes=32 * 1024 * 1024,          # tiny usage; safe on v5e/v6e/v7x
        ),
    )(x_tok, x_tok, w_qk_p, b_qk_p, w_v_p, b_v_p, w_o_p, b_o_p)

    # --- back to NCHW, dropping channel padding ---
    out = out_padded[:, :, :out_channels]
    return out.transpose(0, 2, 1).reshape(N, out_channels, H, Wd)


# ----------------------------------------------------------------------------- reference
def reference_forward(x, params, *, key_channels, bn_eps=1e-5):
    """Pure-JAX f32 replica of the PyTorch forward (scale==1, eval-mode BN)."""
    N, Cin, H, Wd = x.shape
    HW = H * Wd
    xt = x.reshape(N, Cin, HW).transpose(0, 2, 1)                     # (N, HW, Cin)
    z = xt @ params["w_qk"] + params["b_qk"]
    z = (z - params["bn_mean"]) * (params["bn_gamma"]
                                   / jnp.sqrt(params["bn_var"] + bn_eps)) + params["bn_beta"]
    q = jax.nn.relu(z)                                                # (N, HW, Ck)
    k = q                                                             # f_query is f_key
    v = xt @ params["w_v"] + params["b_v"]                            # (N, HW, Cv)
    s = jnp.einsum("nqc,nkc->nqk", q, k) * (key_channels ** -0.5)
    p = jax.nn.softmax(s, axis=-1)
    ctx = jnp.einsum("nqk,nkc->nqc", p, v)
    out = ctx @ params["w_out"] + params["b_out"]                     # (N, HW, Cout)
    return out.transpose(0, 2, 1).reshape(N, -1, H, Wd)


# ----------------------------------------------------------------------------- test
if __name__ == "__main__":
    # Small but tiling-exercising shapes: HW = 256 -> 2 query tiles x 2 kv tiles.
    N, Cin, H, W = 2, 32, 16, 16
    Ck, Cv, Cout = Cin // 2, Cin, Cin

    key = jax.random.PRNGKey(0)
    ks = jax.random.split(key, 12)

    def uinit(k, shape, fan_in):
        bound = 1.0 / math.sqrt(fan_in)
        return jax.random.uniform(k, shape, jnp.float32, -bound, bound)

    x = jax.random.normal(ks[0], (N, Cin, H, W), jnp.float32)
    params = {
        "w_qk": uinit(ks[1], (Cin, Ck), Cin),
        "b_qk": uinit(ks[2], (Ck,), Cin),
        "bn_gamma": 1.0 + 0.1 * jax.random.normal(ks[3], (Ck,), jnp.float32),
        "bn_beta": 0.1 * jax.random.normal(ks[4], (Ck,), jnp.float32),
        "bn_mean": 0.1 * jax.random.normal(ks[5], (Ck,), jnp.float32),
        "bn_var": jnp.abs(1.0 + 0.1 * jax.random.normal(ks[6], (Ck,), jnp.float32)),
        "w_v": uinit(ks[7], (Cin, Cv), Cin),
        "b_v": uinit(ks[8], (Cv,), Cin),
        # PyTorch zero-inits W (output would be all zeros); use non-zero test values
        # so the kernel path is actually exercised numerically.
        "w_out": uinit(ks[9], (Cv, Cout), Cv),
        "b_out": uinit(ks[10], (Cout,), Cv),
    }

    fwd = jax.jit(functools.partial(self_attention_block, key_channels=Ck,
                                    value_channels=Cv, out_channels=Cout))
    out = jax.block_until_ready(fwd(x, params))

    ref = jax.block_until_ready(
        reference_forward(x, params, key_channels=Ck))

    assert out.shape == (N, Cout, H, W), out.shape
    assert not bool(jnp.any(jnp.isnan(out))), "NaNs in kernel output"
    max_err = float(jnp.max(jnp.abs(out - ref)))
    ref_scale = float(jnp.max(jnp.abs(ref))) + 1e-6
    assert max_err / ref_scale < 8e-2, f"mismatch: max_err={max_err}, ref_scale={ref_scale}"

    print("KERNEL_OK")
</pallas_src>

<mosaic_0001>
module attributes {stable_mosaic.version = 11 : i64} {
  func.func @_self_attn_kernel(%arg0: i32, %arg1: i32, %arg2: i32, %arg3: memref<1x128x128xbf16, #tpu.memory_space<vmem>>, %arg4: memref<1x128x128xbf16, #tpu.memory_space<vmem>>, %arg5: memref<128x128xbf16, #tpu.memory_space<vmem>>, %arg6: memref<1x128xf32, #tpu.memory_space<vmem>>, %arg7: memref<128x128xbf16, #tpu.memory_space<vmem>>, %arg8: memref<1x128xf32, #tpu.memory_space<vmem>>, %arg9: memref<128x128xbf16, #tpu.memory_space<vmem>>, %arg10: memref<1x128xf32, #tpu.memory_space<vmem>>, %arg11: memref<1x128x128xf32, #tpu.memory_space<vmem>>, %arg12: memref<128x128xbf16, #tpu.memory_space<vmem>>, %arg13: memref<128x1xf32, #tpu.memory_space<vmem>>, %arg14: memref<128x1xf32, #tpu.memory_space<vmem>>, %arg15: memref<128x128xf32, #tpu.memory_space<vmem>>) attributes {dimension_semantics = [#tpu.dimension_semantics<parallel>, #tpu.dimension_semantics<parallel>, #tpu.dimension_semantics<arbitrary>], iteration_bounds = array<i64: 2, 2, 2>, scalar_prefetch = 0 : i64, scratch_operands = 4 : i64, tpu.core_type = #tpu.core_type<tc>, window_params = [{transform_indices = @transform_0, window_bounds = array<i64: 1, 128, 128>}, {transform_indices = @transform_1, window_bounds = array<i64: 1, 128, 128>}, {pipeline_mode = #tpu.pipeline_mode<synchronous>, transform_indices = @transform_2, window_bounds = array<i64: 128, 128>}, {pipeline_mode = #tpu.pipeline_mode<synchronous>, transform_indices = @transform_3, window_bounds = array<i64: 1, 128>}, {pipeline_mode = #tpu.pipeline_mode<synchronous>, transform_indices = @transform_4, window_bounds = array<i64: 128, 128>}, {pipeline_mode = #tpu.pipeline_mode<synchronous>, transform_indices = @transform_5, window_bounds = array<i64: 1, 128>}, {pipeline_mode = #tpu.pipeline_mode<synchronous>, transform_indices = @transform_6, window_bounds = array<i64: 128, 128>}, {pipeline_mode = #tpu.pipeline_mode<synchronous>, transform_indices = @transform_7, window_bounds = array<i64: 1, 128>}, {transform_indices = @transform_8, window_bounds = array<i64: 1, 128, 128>}]} {
    %c0_i32 = arith.constant 0 : i32
    %0 = arith.cmpi eq, %arg2, %c0_i32 : i32
    %1 = arith.extui %0 : i1 to i32
    %c0_i32_0 = arith.constant 0 : i32
    %2 = arith.cmpi ne, %1, %c0_i32_0 : i32
    scf.if %2 {
      %c0_32 = arith.constant 0 : index
      %c0_33 = arith.constant 0 : index
      %c0_34 = arith.constant 0 : index
      %47 = vector.load %arg3[%c0_32, %c0_33, %c0_34] : memref<1x128x128xbf16, #tpu.memory_space<vmem>>, vector<1x128x128xbf16>
      %48 = vector.shape_cast %47 : vector<1x128x128xbf16> to vector<128x128xbf16>
      %c0_35 = arith.constant 0 : index
      %c0_36 = arith.constant 0 : index
      %49 = vector.load %arg5[%c0_35, %c0_36] : memref<128x128xbf16, #tpu.memory_space<vmem>>, vector<128x128xbf16>
      %cst_37 = arith.constant dense<0.000000e+00> : vector<128x128xf32>
      %50 = tpu.matmul %48, %49, %cst_37 {dimension_numbers = #tpu.dot_dimension_numbers<[1], [0], [0], [1], [0, 0, 1, 1], [], []>} : vector<128x128xbf16>, vector<128x128xbf16>, vector<128x128xf32> -> vector<128x128xf32>
      %c0_38 = arith.constant 0 : index
      %c0_39 = arith.constant 0 : index
      %51 = vector.load %arg6[%c0_38, %c0_39] : memref<1x128xf32, #tpu.memory_space<vmem>>, vector<1x128xf32>
      %52 = vector.broadcast %51 : vector<1x128xf32> to vector<128x128xf32>
      %53 = arith.addf %50, %52 : vector<128x128xf32>
      %cst_40 = arith.constant 0.000000e+00 : f32
      %54 = vector.broadcast %cst_40 : f32 to vector<128x128xf32>
      %55 = arith.maximumf %53, %54 : vector<128x128xf32>
      %56 = arith.truncf %55 : vector<128x128xf32> to vector<128x128xbf16>
      %c0_41 = arith.constant 0 : index
      %c0_42 = arith.constant 0 : index
      %57 = vector.load %arg12[%c0_41, %c0_42] : memref<128x128xbf16, #tpu.memory_space<vmem>>, vector<128x128xbf16>
      tpu.vector_store %arg12[%c0_41, %c0_42], %56 {strides = array<i32>} : memref<128x128xbf16, #tpu.memory_space<vmem>>, vector<128x128xbf16>,
      %cst_43 = arith.constant -1.000000e+30 : f32
      %58 = vector.broadcast %cst_43 : f32 to vector<128x1xf32>
      %c0_44 = arith.constant 0 : index
      %c0_45 = arith.constant 0 : index
      %59 = vector.load %arg13[%c0_44, %c0_45] : memref<128x1xf32, #tpu.memory_space<vmem>>, vector<128x1xf32>
      tpu.vector_store %arg13[%c0_44, %c0_45], %58 {strides = array<i32>} : memref<128x1xf32, #tpu.memory_space<vmem>>, vector<128x1xf32>,
      %cst_46 = arith.constant 0.000000e+00 : f32
      %60 = vector.broadcast %cst_46 : f32 to vector<128x1xf32>
      %c0_47 = arith.constant 0 : index
      %c0_48 = arith.constant 0 : index
      %61 = vector.load %arg14[%c0_47, %c0_48] : memref<128x1xf32, #tpu.memory_space<vmem>>, vector<128x1xf32>
      tpu.vector_store %arg14[%c0_47, %c0_48], %60 {strides = array<i32>} : memref<128x1xf32, #tpu.memory_space<vmem>>, vector<128x1xf32>,
      %cst_49 = arith.constant 0.000000e+00 : f32
      %62 = vector.broadcast %cst_49 : f32 to vector<128x128xf32>
      %c0_50 = arith.constant 0 : index
      %c0_51 = arith.constant 0 : index
      %63 = vector.load %arg15[%c0_50, %c0_51] : memref<128x128xf32, #tpu.memory_space<vmem>>, vector<128x128xf32>
      tpu.vector_store %arg15[%c0_50, %c0_51], %62 {strides = array<i32>} : memref<128x128xf32, #tpu.memory_space<vmem>>, vector<128x128xf32>,
    } else {
    }
    %c0 = arith.constant 0 : index
    %c0_1 = arith.constant 0 : index
    %c0_2 = arith.constant 0 : index
    %3 = vector.load %arg4[%c0, %c0_1, %c0_2] : memref<1x128x128xbf16, #tpu.memory_space<vmem>>, vector<1x128x128xbf16>
    %4 = vector.shape_cast %3 : vector<1x128x128xbf16> to vector<128x128xbf16>
    %c0_3 = arith.constant 0 : index
    %c0_4 = arith.constant 0 : index
    %5 = vector.load %arg5[%c0_3, %c0_4] : memref<128x128xbf16, #tpu.memory_space<vmem>>, vector<128x128xbf16>
    %cst = arith.constant dense<0.000000e+00> : vector<128x128xf32>
    %6 = tpu.matmul %4, %5, %cst {dimension_numbers = #tpu.dot_dimension_numbers<[1], [0], [0], [1], [0, 0, 1, 1], [], []>} : vector<128x128xbf16>, vector<128x128xbf16>, vector<128x128xf32> -> vector<128x128xf32>
    %c0_5 = arith.constant 0 : index
    %c0_6 = arith.constant 0 : index
    %7 = vector.load %arg6[%c0_5, %c0_6] : memref<1x128xf32, #tpu.memory_space<vmem>>, vector<1x128xf32>
    %8 = vector.broadcast %7 : vector<1x128xf32> to vector<128x128xf32>
    %9 = arith.addf %6, %8 : vector<128x128xf32>
    %cst_7 = arith.constant 0.000000e+00 : f32
    %10 = vector.broadcast %cst_7 : f32 to vector<128x128xf32>
    %11 = arith.maximumf %9, %10 : vector<128x128xf32>
    %12 = arith.truncf %11 : vector<128x128xf32> to vector<128x128xbf16>
    %c0_8 = arith.constant 0 : index
    %c0_9 = arith.constant 0 : index
    %13 = vector.load %arg7[%c0_8, %c0_9] : memref<128x128xbf16, #tpu.memory_space<vmem>>, vector<128x128xbf16>
    %cst_10 = arith.constant dense<0.000000e+00> : vector<128x128xf32>
    %14 = tpu.matmul %4, %13, %cst_10 {dimension_numbers = #tpu.dot_dimension_numbers<[1], [0], [0], [1], [0, 0, 1, 1], [], []>} : vector<128x128xbf16>, vector<128x128xbf16>, vector<128x128xf32> -> vector<128x128xf32>
    %c0_11 = arith.constant 0 : index
    %c0_12 = arith.constant 0 : index
    %15 = vector.load %arg8[%c0_11, %c0_12] : memref<1x128xf32, #tpu.memory_space<vmem>>, vector<1x128xf32>
    %16 = vector.broadcast %15 : vector<1x128xf32> to vector<128x128xf32>
    %17 = arith.addf %14, %16 : vector<128x128xf32>
    %18 = arith.truncf %17 : vector<128x128xf32> to vector<128x128xbf16>
    %c0_13 = arith.constant 0 : index
    %c0_14 = arith.constant 0 : index
    %19 = vector.load %arg12[%c0_13, %c0_14] : memref<128x128xbf16, #tpu.memory_space<vmem>>, vector<128x128xbf16>
    %cst_15 = arith.constant dense<0.000000e+00> : vector<128x128xf32>
    %20 = tpu.matmul %19, %12, %cst_15 {dimension_numbers = #tpu.dot_dimension_numbers<[1], [1], [0], [0], [0, 0, 1, 0], [], []>} : vector<128x128xbf16>, vector<128x128xbf16>, vector<128x128xf32> -> vector<128x128xf32>
    %c0_16 = arith.constant 0 : index
    %c0_17 = arith.constant 0 : index
    %21 = vector.load %arg13[%c0_16, %c0_17] : memref<128x1xf32, #tpu.memory_space<vmem>>, vector<128x1xf32>
    %cst_18 = arith.constant dense<0xFF800000> : vector<128xf32>
    %22 = vector.multi_reduction <maximumf>, %20, %cst_18 [1] : vector<128x128xf32> to vector<128xf32>
    %23 = vector.shape_cast %22 : vector<128xf32> to vector<128x1xf32>
    %24 = arith.maximumf %21, %23 : vector<128x1xf32>
    %25 = arith.subf %21, %24 : vector<128x1xf32>
    %26 = math.exp %25 : vector<128x1xf32>
    %27 = vector.broadcast %24 : vector<128x1xf32> to vector<128x128xf32>
    %28 = arith.subf %20, %27 : vector<128x128xf32>
    %29 = math.exp %28 : vector<128x128xf32>
    %c0_19 = arith.constant 0 : index
    %c0_20 = arith.constant 0 : index
    %30 = vector.load %arg14[%c0_19, %c0_20] : memref<128x1xf32, #tpu.memory_space<vmem>>, vector<128x1xf32>
    %31 = arith.mulf %26, %30 : vector<128x1xf32>
    %cst_21 = arith.constant dense<0.000000e+00> : vector<128xf32>
    %32 = vector.multi_reduction <add>, %29, %cst_21 [1] : vector<128x128xf32> to vector<128xf32>
    %33 = vector.shape_cast %32 : vector<128xf32> to vector<128x1xf32>
    %34 = arith.addf %31, %33 : vector<128x1xf32>
    %c0_22 = arith.constant 0 : index
    %c0_23 = arith.constant 0 : index
    %35 = vector.load %arg14[%c0_22, %c0_23] : memref<128x1xf32, #tpu.memory_space<vmem>>, vector<128x1xf32>
    tpu.vector_store %arg14[%c0_22, %c0_23], %34 {strides = array<i32>} : memref<128x1xf32, #tpu.memory_space<vmem>>, vector<128x1xf32>,
    %c0_24 = arith.constant 0 : index
    %c0_25 = arith.constant 0 : index
    %36 = vector.load %arg15[%c0_24, %c0_25] : memref<128x128xf32, #tpu.memory_space<vmem>>, vector<128x128xf32>
    %37 = vector.broadcast %26 : vector<128x1xf32> to vector<128x128xf32>
    %38 = arith.mulf %37, %36 : vector<128x128xf32>
    %39 = arith.truncf %29 : vector<128x128xf32> to vector<128x128xbf16>
    %cst_26 = arith.constant dense<0.000000e+00> : vector<128x128xf32>
    %40 = tpu.matmul %39, %18, %cst_26 {dimension_numbers = #tpu.dot_dimension_numbers<[1], [0], [0], [1], [0, 0, 1, 1], [], []>} : vector<128x128xbf16>, vector<128x128xbf16>, vector<128x128xf32> -> vector<128x128xf32>
    %41 = arith.addf %38, %40 : vector<128x128xf32>
    %c0_27 = arith.constant 0 : index
    %c0_28 = arith.constant 0 : index
    %42 = vector.load %arg15[%c0_27, %c0_28] : memref<128x128xf32, #tpu.memory_space<vmem>>, vector<128x128xf32>
    tpu.vector_store %arg15[%c0_27, %c0_28], %41 {strides = array<i32>} : memref<128x128xf32, #tpu.memory_space<vmem>>, vector<128x128xf32>,
    %c0_29 = arith.constant 0 : index
    %c0_30 = arith.constant 0 : index
    %43 = vector.load %arg13[%c0_29, %c0_30] : memref<128x1xf32, #tpu.memory_space<vmem>>, vector<128x1xf32>
    tpu.vector_store %arg13[%c0_29, %c0_30], %24 {strides = array<i32>} : memref<128x1xf32, #tpu.memory_space<vmem>>, vector<128x1xf32>,
    %c1_i32 = arith.constant 1 : i32
    %44 = arith.cmpi eq, %arg2, %c1_i32 : i32
    %45 = arith.extui %44 : i1 to i32
    %c0_i32_31 = arith.constant 0 : i32
    %46 = arith.cmpi ne, %45, %c0_i32_31 : i32
    scf.if %46 {
      %c0_32 = arith.constant 0 : index
      %c0_33 = arith.constant 0 : index
      %47 = vector.load %arg14[%c0_32, %c0_33] : memref<128x1xf32, #tpu.memory_space<vmem>>, vector<128x1xf32>
      %48 = tpu.reciprocal %47 {approx = true} : vector<128x1xf32> -> vector<128x1xf32>
      %c0_34 = arith.constant 0 : index
      %c0_35 = arith.constant 0 : index
      %49 = vector.load %arg15[%c0_34, %c0_35] : memref<128x128xf32, #tpu.memory_space<vmem>>, vector<128x128xf32>
      %50 = vector.broadcast %48 : vector<128x1xf32> to vector<128x128xf32>
      %51 = arith.mulf %49, %50 : vector<128x128xf32>
      %52 = arith.truncf %51 : vector<128x128xf32> to vector<128x128xbf16>
      %c0_36 = arith.constant 0 : index
      %c0_37 = arith.constant 0 : index
      %53 = vector.load %arg9[%c0_36, %c0_37] : memref<128x128xbf16, #tpu.memory_space<vmem>>, vector<128x128xbf16>
      %cst_38 = arith.constant dense<0.000000e+00> : vector<128x128xf32>
      %54 = tpu.matmul %52, %53, %cst_38 {dimension_numbers = #tpu.dot_dimension_numbers<[1], [0], [0], [1], [0, 0, 1, 1], [], []>} : vector<128x128xbf16>, vector<128x128xbf16>, vector<128x128xf32> -> vector<128x128xf32>
      %c0_39 = arith.constant 0 : index
      %c0_40 = arith.constant 0 : index
      %55 = vector.load %arg10[%c0_39, %c0_40] : memref<1x128xf32, #tpu.memory_space<vmem>>, vector<1x128xf32>
      %56 = vector.broadcast %55 : vector<1x128xf32> to vector<128x128xf32>
      %57 = arith.addf %54, %56 : vector<128x128xf32>
      %c0_41 = arith.constant 0 : index
      %c0_42 = arith.constant 0 : index
      %c0_43 = arith.constant 0 : index
      %58 = vector.load %arg11[%c0_41, %c0_42, %c0_43] : memref<1x128x128xf32, #tpu.memory_space<vmem>>, vector<1x128x128xf32>
      %59 = vector.shape_cast %58 : vector<1x128x128xf32> to vector<128x128xf32>
      %60 = vector.shape_cast %57 : vector<128x128xf32> to vector<1x128x128xf32>
      tpu.vector_store %arg11[%c0_41, %c0_42, %c0_43], %60 {strides = array<i32>} : memref<1x128x128xf32, #tpu.memory_space<vmem>>, vector<1x128x128xf32>,
    } else {
    }
    return
  }
  func.func @transform_0(%arg0: i32, %arg1: i32, %arg2: i32) -> (i32, i32, i32) {
    %c0_i32 = arith.constant 0 : i32
    %c0_i32_0 = arith.constant 0 : i32
    return %arg0, %arg1, %c0_i32 : i32, i32, i32
  }
  func.func @transform_1(%arg0: i32, %arg1: i32, %arg2: i32) -> (i32, i32, i32) {
    %c0_i32 = arith.constant 0 : i32
    %c0_i32_0 = arith.constant 0 : i32
    return %arg0, %arg2, %c0_i32 : i32, i32, i32
  }
  func.func @transform_2(%arg0: i32, %arg1: i32, %arg2: i32) -> (i32, i32) {
    %c0_i32 = arith.constant 0 : i32
    %c0_i32_0 = arith.constant 0 : i32
    %c0_i32_1 = arith.constant 0 : i32
    return %c0_i32, %c0_i32_0 : i32, i32
  }
  func.func @transform_3(%arg0: i32, %arg1: i32, %arg2: i32) -> (i32, i32) {
    %c0_i32 = arith.constant 0 : i32
    %c0_i32_0 = arith.constant 0 : i32
    %c0_i32_1 = arith.constant 0 : i32
    return %c0_i32, %c0_i32_0 : i32, i32
  }
  func.func @transform_4(%arg0: i32, %arg1: i32, %arg2: i32) -> (i32, i32) {
    %c0_i32 = arith.constant 0 : i32
    %c0_i32_0 = arith.constant 0 : i32
    %c0_i32_1 = arith.constant 0 : i32
    return %c0_i32, %c0_i32_0 : i32, i32
  }
  func.func @transform_5(%arg0: i32, %arg1: i32, %arg2: i32) -> (i32, i32) {
    %c0_i32 = arith.constant 0 : i32
    %c0_i32_0 = arith.constant 0 : i32
    %c0_i32_1 = arith.constant 0 : i32
    return %c0_i32, %c0_i32_0 : i32, i32
  }
  func.func @transform_6(%arg0: i32, %arg1: i32, %arg2: i32) -> (i32, i32) {
    %c0_i32 = arith.constant 0 : i32
    %c0_i32_0 = arith.constant 0 : i32
    %c0_i32_1 = arith.constant 0 : i32
    return %c0_i32, %c0_i32_0 : i32, i32
  }
  func.func @transform_7(%arg0: i32, %arg1: i32, %arg2: i32) -> (i32, i32) {
    %c0_i32 = arith.constant 0 : i32
    %c0_i32_0 = arith.constant 0 : i32
    %c0_i32_1 = arith.constant 0 : i32
    return %c0_i32, %c0_i32_0 : i32, i32
  }
  func.func @transform_8(%arg0: i32, %arg1: i32, %arg2: i32) -> (i32, i32, i32) {
    %c0_i32 = arith.constant 0 : i32
    %c0_i32_0 = arith.constant 0 : i32
    return %arg0, %arg1, %c0_i32 : i32, i32, i32
  }
}

</mosaic_0001>

<bundles_post_ra>
// kernel: self_attention_block.1
= control target key start
LH: loop header
LB: loop body
LE: loop exit
PB: predicated region body
PF: predicated region fallthrough
CT: control target
= control target key end

     0   :  { %13 = vsyncpa [#allocation7], 0  ;;  %s4011_s0 = inlined_call_operand.vmem [shape: bf16[2,256,128], index: 0, kind: input, shape index: {}, may-alias: {0,1}]   ;;  %s4012_s1 = inlined_call_operand.vmem [shape: bf16[2,256,128], index: 1, kind: input, shape index: {}, may-alias: {0,1}]   ;;  %s4013_s2 = inlined_call_operand.vmem [shape: bf16[128,128], index: 2, kind: input, shape index: {}]   ;;  %s4014_s3 = inlined_call_operand.vmem [shape: f32[1,128], index: 3, kind: input, shape index: {}]   ;;  %s4015_s4 = inlined_call_operand.vmem [shape: bf16[128,128], index: 4, kind: input, shape index: {}]   ;;  %s4016_s5 = inlined_call_operand.vmem [shape: f32[1,128], index: 5, kind: input, shape index: {}]   ;;  %s4017_s6 = inlined_call_operand.vmem [shape: bf16[128,128], index: 6, kind: input, shape index: {}]   ;;  %s4018_s7 = inlined_call_operand.vmem [shape: f32[1,128], index: 7, kind: input, shape index: {}]   ;;  %s4019_s8 = inlined_call_operand.hbm [shape: f32[2,256,128], index: 8, kind: output, shape index: {}]  }
   0x1   :  { %15 = vsyncpa [#allocation7 + $0x1], 0  ;;  %s3307_s27 = smov 0   ;;  %s3309_s28 = smov 0  }
   0x2   :  { %s3311_s29 = smov 0   ;;  %s3313_s30 = smov 0  }
   0x3   :  { %s3315_s9 = smov 0   ;;  %s3317_s10 = smov 0  }
   0x4   :  { %s3319_s11 = smov 0   ;;  %s3321_s12 = smov 0  }
   0x5   :  { %s3323_s13 = smov 0   ;;  %s3325_s14 = smov 0  }
   0x6 LB: > { %4029 = sst [smem:[#allocation9_spill]] %s3217_s27  ;;  %s2417_s15 = sadd.s32 4294967295, %s3253_s14   ;;  %s3253_s14 = sphi %s3325_s14, %s21_s14   ;;  %s3249_s13 = sphi %s3323_s13, %s4051_s13   ;;  %s3245_s12 = sphi %s3321_s12, %s4050_s12   ;;  %s3241_s11 = sphi %s3319_s11, %s4049_s11   ;;  %s3237_s10 = sphi %s3317_s10, %s4048_s10   ;;  %s3233_s9 = sphi %s3315_s9, %s4047_s9   ;;  %s3229_s30 = sphi %s3313_s30, %s4046_s30   ;;  %s3225_s29 = sphi %s3311_s29, %s4045_s29   ;;  %s3221_s28 = sphi %s3309_s28, %s4053_s28   ;;  %s3217_s27 = sphi %s3307_s27, %s4052_s27  }
   0x7   : > { %4030 = sst [smem:[#allocation10_spill]] %s3225_s29  ;;  %s2418_s16 = sadd.s32 4294967294, %s3253_s14  }
   0x8   : > { %4031 = sst [smem:[#allocation11_spill]] %s3241_s11  ;;  %s33_s17 = sadd.s32 1, %s3241_s11 }
   0x9   : > { %4032 = sst [smem:[#allocation12_spill]] %s3245_s12  ;;  %p34_p0 = scmp.ge.s32.totalorder %s33_s17, 2 }
   0xa   : > { %4033 = sst [smem:[#allocation13_spill]] %s3249_s13  ;;  %s36_s18 = sadd.s32 1, %s3245_s12 }
   0xb   : > { %s40_s19 = sadd.s32 1, %s3249_s13  ;;  %p241_p1 = scmp.ne.s32.totalorder %s3225_s29, %s3221_s28 }
   0xc   : > { %s4055_s17 = smov (%p34_p0, %s33_s17), 0  ;;  %s4057_s18 = smov (!%p34_p0, %s36_s18), %s3245_s12 }
   0xd   : > { %4034 = sst [smem:[#allocation14_spill]] %s4055_s17  ;;  %p242_p2 = scmp.eq.s32.totalorder %s2417_s15, 7 }
   0xe   : > { %p247_p3 = scmp.ne.s32.totalorder %s3221_s28, %s3217_s27  ;;  %p38_p4 = scmp.ge.s32.totalorder %s4057_s18, 2 }
   0xf   : > { %p248_p5 = scmp.eq.s32.totalorder %s2418_s16, 7  ;;  %p3369_p6 = por %p242_p2, %p241_p1 }
  0x10   : > { %s4059_s18 = smov (%p38_p4, %s4057_s18), 0  ;;  %s4061_s19 = smov (!%p38_p4, %s40_s19), %s3249_s13 }
  0x11   : > { %4036 = sst [smem:[#allocation15_spill]] %s4059_s18  ;;  %p3376_p7 = por %p248_p5, %p247_p3 }
  0x12   : > { %p2421_p8 = scmp.ge.s32.totalorder %s3253_s14, 1  ;;  %p42_p9 = scmp.ge.s32.totalorder %s4061_s19, 2 }
  0x13   : > { %s4037_s21 = scalar_select %p3376_p7, 1, 0 }
  0x14   : > { %p310_p10 = scmp.lt.s32.totalorder %s3253_s14, 9  ;;  %s227_s22 = ssub.s32 %s3245_s12, %s4059_s18 }
  0x15   : > { %4038 = sst [smem:[#allocation16_spill]] %s4037_s21  ;;  %s4063_s19 = smov (%p42_p9, %s4061_s19), 0 }
  0x16   : > { %4039 = sst [smem:[#allocation17_spill]] %s4063_s19  ;;  %p311_p11 = pnand %p2421_p8, %p310_p10 }
  0x17   : > { %s226_s23 = ssub.s32 %s3249_s13, %s4063_s19  ;;  %s231_s25 = sadd.s32 1, %s3225_s29 }
  0x18   : > { %s228_s24 = sor.u32 %s227_s22, %s226_s23  ;;  %s4027_s15 = sand.u32 (!%p311_p11), 1, %s3221_s28  }
  0x19   : > { %p229_p12 = scmp.eq.s32.totalorder %s228_s24, 0  ;;  %314 = sbr.rel (%p311_p11) target bundleno = 1735 (0x6c7), region = 52 }
  0x1a   : > { %s3394_s16 = sshll.u32 (!%p311_p11), %s3233_s9, 4  ;;  %s2422_s18 = sshll.u32 (!%p311_p11), %s4027_s15, 7 }
  0x1b   : > { %s3390_s26 = scalar_select %p229_p12, %s3225_s29, %s231_s25  }
  0x1c   : > { %p358_p13 = scmp.lt.s32.totalorder (!%p311_p11), %s3237_s10, 1  ;;  %p360_p0 = scmp.lt.s32.totalorder (!%p311_p11), %s3394_s16, 31 }
  0x1d   : > { %4040 = sst [smem:[#allocation18_spill]] %s3390_s26  ;;  %s2426_s25 = sshll.u32 (!%p311_p11), %s3229_s30, 4 }
  0x1e   : > { %s359_s22 = scalar_select %p358_p13, %s3237_s10, 1 }
  0x1f   : > { %s361_s23 = scalar_select %p360_p0, %s3394_s16, 31 }
  0x20   : > { %s2424_s24 = sshll.u32 %s359_s22, 5  ;;  %p370_p1 = scmp.lt.s32.totalorder %s2426_s25, 31 }
  0x21   : > { %s363_s19 = sadd.s32 %s2424_s24, %s361_s23  ;;  %s3413_s27 = scalar_lea.vmem [#allocation6], %s2422_s18 }
  0x22   : > { %s2425_s17 = sshll.u32 %s363_s19, 2  ;;  %s4065_s25 = smov (!%p370_p1, %s2426_s25), 31 }
  0x23   : > { %s3406_s11 = scalar_lea.vmem %s4011_s0, %s2425_s17  ;;  %s373_s9 = sadd.s32 %s2424_s24, %s4065_s25 }
  0x24   : > { %s2428_s26 = sshll.u32 %s373_s9, 2  ;;  %p2429_p2 = scmp.ne.s32.totalorder %s3229_s30, 0 }
  0x25   : > { %s3411_s15 = scalar_lea.vmem %s4012_s1, %s2428_s26 }
  0x26   : > { %382 = sbr.rel (%p2429_p2) target bundleno = 290 (0x122), region = 56 }
  0x2b   : > { %v2989_v0 = vld [vmem:[%s4013_s2 + $0x38] sm:$0xff]   ;;  %v2990_v1 = vld [vmem:[%s4013_s2 + $0x30] sm:$0xff]   ;;  %v2991_v2 = vld [vmem:[%s4013_s2 + $0x28] sm:$0xff]   ;;  %vm711_vm0 = vcmask 7168   ;;  %v3255_v16 = vmov -1e+30  }
  0x2c   : > { %2672 = vmatprep.subr.bf16.mxu0 %v2989_v0  ;;  %2864 = vmatprep.subr.bf16.mxu1 %v2989_v0  ;;  %v2992_v3 = vld [vmem:[%s4013_s2 + $0x20] sm:$0xff]   ;;  %v2993_v6 = vld [vmem:[%s4013_s2 + $0x18] sm:$0xff]   ;;  %v2994_v7 = vld [vmem:[%s4013_s2 + $0x10] sm:$0xff]   ;;  %712 = vst.msk [vmem:[#allocation3] sm:$0xff] %vm711_vm0, %v3255_v16  ;;  %v3256_v17 = vmov 0.0  }
  0x2d   : > { %2673 = vmatpush3.bf16.msra.mxu0 %v2989_v0  ;;  %2872 = vmatpush3.bf16.msra.mxu1 %v2989_v0  ;;  %v2997_v4 = vld [vmem:[%s3406_s11] sm:$0xff]   ;;  %v2995_v8 = vld [vmem:[%s4013_s2 + $0x8] sm:$0xff]   ;;  %v3001_v12 = vld [vmem:[%s3406_s11 + $0x10] sm:$0xff]   ;;  %713 = vst.msk [vmem:[#allocation3 + $0x8] sm:$0xff] %vm711_vm0, %v3255_v16 }
  0x2e   : > { %2674 = vmatprep.subr.bf16.mxu0 %v2990_v1  ;;  %2865 = vmatprep.subr.bf16.mxu1 %v2990_v1  ;;  %v2998_v5 = vld [vmem:[%s3406_s11 + $0x20] sm:$0xff]   ;;  %v2999_v10 = vld [vmem:[%s3406_s11 + $0x8] sm:$0xff]   ;;  %v3002_v13 = vld [vmem:[%s3406_s11 + $0x30] sm:$0xff]   ;;  %714 = vst.msk [vmem:[#allocation3 + $0x10] sm:$0xff] %vm711_vm0, %v3255_v16 }
  0x2f   : > { %2688 = vmatprep.mubr.bf16.mxu0 %v2997_v4  ;;  %2696 = vmatprep.mubr.bf16.mxu1 %v2998_v5  ;;  %v2996_v9 = vld [vmem:[%s4013_s2] sm:$0xff]   ;;  %v3000_v11 = vld [vmem:[%s3406_s11 + $0x28] sm:$0xff]   ;;  %v3003_v14 = vld [vmem:[%s3406_s11 + $0x18] sm:$0xff]   ;;  %715 = vst.msk [vmem:[#allocation3 + $0x18] sm:$0xff] %vm711_vm0, %v3255_v16 }
  0x30   : > { %v3004_v15 = vld [vmem:[%s3406_s11 + $0x38] sm:$0xff]   ;;  %716 = vst.msk [vmem:[#allocation3 + $0x20] sm:$0xff] %vm711_vm0, %v3255_v16  ;;  %717 = vst.msk [vmem:[#allocation3 + $0x28] sm:$0xff] %vm711_vm0, %v3255_v16  ;;  %v2430_v18 = vld [vmem:[%s4014_s3] ss:$0 sm:$0xff] }
  0x31   : > { %2675 = vmatpush3.bf16.msra.mxu0 %v2990_v1  ;;  %2873 = vmatpush3.bf16.msra.mxu1 %v2990_v1  ;;  %718 = vst.msk [vmem:[#allocation3 + $0x30] sm:$0xff] %vm711_vm0, %v3255_v16  ;;  %719 = vst.msk [vmem:[#allocation3 + $0x38] sm:$0xff] %vm711_vm0, %v3255_v16 }
  0x32   : > { %2676 = vmatprep.subr.bf16.mxu0 %v2991_v2  ;;  %2866 = vmatprep.subr.bf16.mxu1 %v2991_v2  ;;  %720 = vst.msk [vmem:[#allocation3 + $0x40] sm:$0xff] %vm711_vm0, %v3255_v16  ;;  %721 = vst.msk [vmem:[#allocation3 + $0x48] sm:$0xff] %vm711_vm0, %v3255_v16 }
  0x33   : > { %722 = vst.msk [vmem:[#allocation3 + $0x50] sm:$0xff] %vm711_vm0, %v3255_v16  ;;  %723 = vst.msk [vmem:[#allocation3 + $0x58] sm:$0xff] %vm711_vm0, %v3255_v16 }
  0x34   : > { %724 = vst.msk [vmem:[#allocation3 + $0x60] sm:$0xff] %vm711_vm0, %v3255_v16  ;;  %725 = vst.msk [vmem:[#allocation3 + $0x68] sm:$0xff] %vm711_vm0, %v3255_v16 }
  0x35   : > { %2677 = vmatpush3.bf16.msra.mxu0 %v2991_v2  ;;  %2874 = vmatpush3.bf16.msra.mxu1 %v2991_v2  ;;  %726 = vst.msk [vmem:[#allocation3 + $0x70] sm:$0xff] %vm711_vm0, %v3255_v16  ;;  %727 = vst.msk [vmem:[#allocation3 + $0x78] sm:$0xff] %vm711_vm0, %v3255_v16 }
  0x36   : > { %2678 = vmatprep.subr.bf16.mxu0 %v2992_v3  ;;  %2867 = vmatprep.subr.bf16.mxu1 %v2992_v3  ;;  %728 = vst.msk [vmem:[#allocation4] sm:$0xff] %vm711_vm0, %v3256_v17  ;;  %729 = vst.msk [vmem:[#allocation4 + $0x8] sm:$0xff] %vm711_vm0, %v3256_v17 }
  0x37   : > { %730 = vst.msk [vmem:[#allocation4 + $0x10] sm:$0xff] %vm711_vm0, %v3256_v17  ;;  %731 = vst.msk [vmem:[#allocation4 + $0x18] sm:$0xff] %vm711_vm0, %v3256_v17 }
  0x38   : > { %732 = vst.msk [vmem:[#allocation4 + $0x20] sm:$0xff] %vm711_vm0, %v3256_v17  ;;  %733 = vst.msk [vmem:[#allocation4 + $0x28] sm:$0xff] %vm711_vm0, %v3256_v17 }
  0x39   : > { %2679 = vmatpush3.bf16.msra.mxu0 %v2992_v3  ;;  %2875 = vmatpush3.bf16.msra.mxu1 %v2992_v3  ;;  %734 = vst.msk [vmem:[#allocation4 + $0x30] sm:$0xff] %vm711_vm0, %v3256_v17  ;;  %735 = vst.msk [vmem:[#allocation4 + $0x38] sm:$0xff] %vm711_vm0, %v3256_v17 }
  0x3a   : > { %2680 = vmatprep.subr.bf16.mxu0 %v2993_v6  ;;  %2868 = vmatprep.subr.bf16.mxu1 %v2993_v6  ;;  %736 = vst.msk [vmem:[#allocation4 + $0x40] sm:$0xff] %vm711_vm0, %v3256_v17  ;;  %737 = vst.msk [vmem:[#allocation4 + $0x48] sm:$0xff] %vm711_vm0, %v3256_v17 }
  0x3b   : > { %738 = vst.msk [vmem:[#allocation4 + $0x50] sm:$0xff] %vm711_vm0, %v3256_v17  ;;  %739 = vst.msk [vmem:[#allocation4 + $0x58] sm:$0xff] %vm711_vm0, %v3256_v17 }
  0x3c   : > { %740 = vst.msk [vmem:[#allocation4 + $0x60] sm:$0xff] %vm711_vm0, %v3256_v17  ;;  %741 = vst.msk [vmem:[#allocation4 + $0x68] sm:$0xff] %vm711_vm0, %v3256_v17 }
  0x3d   : > { %2681 = vmatpush3.bf16.msra.mxu0 %v2993_v6  ;;  %2876 = vmatpush3.bf16.msra.mxu1 %v2993_v6  ;;  %742 = vst.msk [vmem:[#allocation4 + $0x70] sm:$0xff] %vm711_vm0, %v3256_v17  ;;  %743 = vst.msk [vmem:[#allocation4 + $0x78] sm:$0xff] %vm711_vm0, %v3256_v17 }
  0x3e   : > { %2682 = vmatprep.subr.bf16.mxu0 %v2994_v7  ;;  %2869 = vmatprep.subr.bf16.mxu1 %v2994_v7  ;;  %744 = vst [vmem:[#allocation5 + $0x30] sm:$0xff] %v3256_v17  ;;  %745 = vst [vmem:[#allocation5] sm:$0xff] %v3256_v17 }
  0x3f   : > { %746 = vst [vmem:[#allocation5 + $0x58] sm:$0xff] %v3256_v17  ;;  %747 = vst [vmem:[#allocation5 + $0x18] sm:$0xff] %v3256_v17 }
  0x40   : > { %748 = vst [vmem:[#allocation5 + $0x50] sm:$0xff] %v3256_v17  ;;  %749 = vst [vmem:[#allocation5 + $0x68] sm:$0xff] %v3256_v17 }
  0x41   : > { %2683 = vmatpush3.bf16.msra.mxu0 %v2994_v7  ;;  %2877 = vmatpush3.bf16.msra.mxu1 %v2994_v7  ;;  %750 = vst [vmem:[#allocation5 + $0x8] sm:$0xff] %v3256_v17  ;;  %751 = vst [vmem:[#allocation5 + $0x48] sm:$0xff] %v3256_v17 }
  0x42   : > { %2684 = vmatprep.subr.bf16.mxu0 %v2995_v8  ;;  %2870 = vmatprep.subr.bf16.mxu1 %v2995_v8  ;;  %752 = vst [vmem:[#allocation5 + $0x40] sm:$0xff] %v3256_v17  ;;  %753 = vst [vmem:[#allocation5 + $0x20] sm:$0xff] %v3256_v17 }
  0x43   : > { %754 = vst [vmem:[#allocation5 + $0x10] sm:$0xff] %v3256_v17  ;;  %755 = vst [vmem:[#allocation5 + $0x38] sm:$0xff] %v3256_v17 }
  0x44   : > { %756 = vst [vmem:[#allocation5 + $0x60] sm:$0xff] %v3256_v17  ;;  %757 = vst [vmem:[#allocation5 + $0x70] sm:$0xff] %v3256_v17 }
  0x45   : > { %2685 = vmatpush3.bf16.msra.mxu0 %v2995_v8  ;;  %2878 = vmatpush3.bf16.msra.mxu1 %v2995_v8  ;;  %758 = vst [vmem:[#allocation5 + $0x78] sm:$0xff] %v3256_v17  ;;  %759 = vst [vmem:[#allocation5 + $0x28] sm:$0xff] %v3256_v17 }
  0x46   : > { %2686 = vmatprep.subr.bf16.mxu0 %v2996_v9  ;;  %2871 = vmatprep.subr.bf16.mxu1 %v2996_v9 }
  0x49   : > { %2687 = vmatpush3.bf16.msra.mxu0 %v2996_v9  ;;  %2879 = vmatpush3.bf16.msra.mxu1 %v2996_v9 }
  0x4c   : > { %2689 = vmatmul.mubr.bf16.vlgmr.msra.gmra.mxu0 %v2999_v10  ;;  %2697 = vmatmul.mubr.bf16.vlgmr.msra.gmra.mxu1 %v3000_v11 }
  0x4d   : > { %2692 = vmatprep.mubr.bf16.mxu0 %v3001_v12  ;;  %2700 = vmatprep.mubr.bf16.mxu1 %v3002_v13 }
  0x54   : > { %2693 = vmatmul.mubr.bf16.gmra.mxu0 %v3003_v14  ;;  %2701 = vmatmul.mubr.bf16.gmra.mxu1 %v3004_v15 }
 0x10c   : > { %v2690_v19 = vpop.f32.mrf.mxu0  ;;  %v2698_v20 = vpop.f32.mrf.mxu1 }
 0x10d   : > { %v561_v21 = vadd.f32 %v2690_v19, %v2430_v18  ;;  %v593_v22 = vadd.f32 %v2698_v20, %v2430_v18 }
 0x10e   : > { %v552_v23 = vpop.f32.mrf.mxu0  ;;  %v584_v24 = vpop.f32.mrf.mxu1 }
 0x10f   : > { %v553_v25 = vadd.f32 %v2430_v18, %v552_v23  ;;  %v585_v26 = vadd.f32 %v2430_v18, %v584_v24  ;;  %v617_v31 = vmax.f32 %v561_v21, 0.0  ;;  %v625_v32 = vmax.f32 %v593_v22, 0.0 }
 0x110   : > { %v2691_v27 = vpop.f32.mrf.mxu0  ;;  %v2699_v28 = vpop.f32.mrf.mxu1 }
 0x111   : > { %v564_v29 = vadd.f32 %v2691_v27, %v2430_v18  ;;  %v596_v30 = vadd.f32 %v2699_v28, %v2430_v18  ;;  %v615_v39 = vmax.f32 %v553_v25, 0.0  ;;  %v623_v40 = vmax.f32 %v585_v26, 0.0 }
 0x112   : > { %v555_v33 = vpop.f32.mrf.mxu0  ;;  %v587_v34 = vpop.f32.mrf.mxu1 }
 0x113   : > { %v618_v35 = vmax.f32 %v564_v29, 0.0  ;;  %v626_v36 = vmax.f32 %v596_v30, 0.0  ;;  %v556_v37 = vadd.f32 %v2430_v18, %v555_v33  ;;  %v588_v38 = vadd.f32 %v2430_v18, %v587_v34 }
 0x114   : > { %v2694_v41 = vpop.f32.mrf.mxu0  ;;  %v2702_v42 = vpop.f32.mrf.mxu1 }
 0x115   : > { %v2537_v43 = vpack.c.bf16 %v618_v35, %v617_v31  ;;  %v2557_v44 = vpack.c.bf16 %v626_v36, %v625_v32  ;;  %v616_v45 = vmax.f32 %v556_v37, 0.0  ;;  %v624_v46 = vmax.f32 %v588_v38, 0.0 }
 0x116   : > { %v577_v47 = vadd.f32 %v2694_v41, %v2430_v18  ;;  %v609_v48 = vadd.f32 %v2702_v42, %v2430_v18  ;;  %v568_v49 = vpop.f32.mrf.mxu0  ;;  %v600_v50 = vpop.f32.mrf.mxu1 }
 0x117   : > { %2569 = vst [vmem:[#allocation2 + $0x8] sm:$0xff] %v2537_v43   ;;  %2573 = vst [vmem:[#allocation2 + $0x28] sm:$0xff] %v2557_v44   ;;  %v2532_v51 = vpack.c.bf16 %v616_v45, %v615_v39  ;;  %v2552_v52 = vpack.c.bf16 %v624_v46, %v623_v40  ;;  %v569_v53 = vadd.f32 %v2430_v18, %v568_v49 }
 0x118   : > { %v601_v54 = vadd.f32 %v2430_v18, %v600_v50  ;;  %v2695_v55 = vpop.f32.mrf.mxu0  ;;  %v2703_v56 = vpop.f32.mrf.mxu1  ;;  %v621_v59 = vmax.f32 %v577_v47, 0.0  ;;  %v629_v60 = vmax.f32 %v609_v48, 0.0 }
 0x119   : > { %2533 = vst [vmem:[#allocation2] sm:$0xff] %v2532_v51   ;;  %2572 = vst [vmem:[#allocation2 + $0x20] sm:$0xff] %v2552_v52   ;;  %v580_v57 = vadd.f32 %v2695_v55, %v2430_v18  ;;  %v612_v58 = vadd.f32 %v2703_v56, %v2430_v18  ;;  %v619_v3 = vmax.f32 %v569_v53, 0.0 }
 0x11a   : > { %v571_v61 = vpop.f32.mrf.mxu0  ;;  %v603_v62 = vpop.f32.mrf.mxu1  ;;  %v627_v4 = vmax.f32 %v601_v54, 0.0 }
 0x11b   : > { %v622_v63 = vmax.f32 %v580_v57, 0.0  ;;  %v630_v0 = vmax.f32 %v612_v58, 0.0  ;;  %v572_v1 = vadd.f32 %v2430_v18, %v571_v61  ;;  %v604_v2 = vadd.f32 %v2430_v18, %v603_v62 }
 0x11d   : > { %v2547_v5 = vpack.c.bf16 %v622_v63, %v621_v59  ;;  %v2567_v6 = vpack.c.bf16 %v630_v0, %v629_v60  ;;  %v620_v7 = vmax.f32 %v572_v1, 0.0  ;;  %v628_v8 = vmax.f32 %v604_v2, 0.0 }
 0x11f   : > { %2571 = vst [vmem:[#allocation2 + $0x18] sm:$0xff] %v2547_v5   ;;  %2575 = vst [vmem:[#allocation2 + $0x38] sm:$0xff] %v2567_v6   ;;  %v2542_v9 = vpack.c.bf16 %v620_v7, %v619_v3  ;;  %v2562_v10 = vpack.c.bf16 %v628_v8, %v627_v4 }
 0x121   : > { %2570 = vst [vmem:[#allocation2 + $0x10] sm:$0xff] %v2542_v9   ;;  %2574 = vst [vmem:[#allocation2 + $0x30] sm:$0xff] %v2562_v10  }
 0x122 PF: > { %v3007_v11 = vld [vmem:[%s4013_s2 + $0x38] sm:$0xff]   ;;  %v3008_v12 = vld [vmem:[%s4013_s2 + $0x30] sm:$0xff]   ;;  %v3009_v13 = vld [vmem:[%s4013_s2 + $0x28] sm:$0xff]   ;;  %vm1673_vm1 = vcmask 7168   ;;  %p2497_p3 = scmp.ne.s32.totalorder %s3229_s30, 1 }
 0x123   : > { %2704 = vmatprep.subr.bf16.mxu0 %v3007_v11  ;;  %v3010_v14 = vld [vmem:[%s4013_s2 + $0x20] sm:$0xff]   ;;  %v3011_v16 = vld [vmem:[%s4013_s2 + $0x18] sm:$0xff]   ;;  %v3012_v17 = vld [vmem:[%s4013_s2 + $0x10] sm:$0xff]  }
 0x124   : > { %2705 = vmatpush3.bf16.msra.mxu0 %v3007_v11  ;;  %v3015_v15 = vld [vmem:[%s3411_s15] sm:$0xff]   ;;  %v3013_v18 = vld [vmem:[%s4013_s2 + $0x8] sm:$0xff]   ;;  %v3512_v21 = vld [vmem:[%s3411_s15 + $0x10] sm:$0xff]  }
 0x125   : > { %2706 = vmatprep.subr.bf16.mxu0 %v3008_v12  ;;  %2720 = vmatprep.mubr.bf16.mxu0 %v3015_v15  ;;  %v3014_v19 = vld [vmem:[%s4013_s2] sm:$0xff]   ;;  %v3509_v20 = vld [vmem:[%s3411_s15 + $0x8] sm:$0xff]   ;;  %v3517_v22 = vld [vmem:[%s3411_s15 + $0x18] sm:$0xff]  }
 0x126   : > { %2752 = vmatprep.mubr.bf16.mxu1 %v3015_v15  ;;  %v3520_v23 = vld [vmem:[%s3411_s15 + $0x20] sm:$0xff]   ;;  %v3525_v24 = vld [vmem:[%s3411_s15 + $0x28] sm:$0xff]   ;;  %v3528_v25 = vld [vmem:[%s3411_s15 + $0x30] sm:$0xff]  }
 0x127   : > { %v3533_v26 = vld [vmem:[%s3411_s15 + $0x38] sm:$0xff]   ;;  %v3023_v27 = vld [vmem:[#allocation2] sm:$0xff]   ;;  %v3032_v29 = vld [vmem:[%s4015_s4 + $0x30] sm:$0xff]  }
 0x128   : > { %2707 = vmatpush3.bf16.msra.mxu0 %v3008_v12  ;;  %v3031_v28 = vld [vmem:[%s4015_s4 + $0x38] sm:$0xff]   ;;  %v3033_v30 = vld [vmem:[%s4015_s4 + $0x28] sm:$0xff]   ;;  %v3548_v32 = vld [vmem:[%s4014_s3] ss:$0 sm:$0xff] }
 0x129   : > { %2708 = vmatprep.subr.bf16.mxu0 %v3009_v13  ;;  %2736 = vmatprep.subr.bf16.mxu1 %v3031_v28  ;;  %v3034_v35 = vld [vmem:[%s4015_s4 + $0x20] sm:$0xff]   ;;  %v3035_v43 = vld [vmem:[%s4015_s4 + $0x18] sm:$0xff]   ;;  %v3036_v50 = vld [vmem:[%s4015_s4 + $0x10] sm:$0xff]  }
 0x12a   : > { %2737 = vmatpush3.bf16.msra.mxu1 %v3031_v28  ;;  %v3037_v53 = vld [vmem:[%s4015_s4 + $0x8] sm:$0xff]   ;;  %v3038_v56 = vld [vmem:[%s4015_s4] sm:$0xff]  }
 0x12b   : > { %2738 = vmatprep.subr.bf16.mxu1 %v3032_v29 }
 0x12c   : > { %2709 = vmatpush3.bf16.msra.mxu0 %v3009_v13 }
 0x12d   : > { %2710 = vmatprep.subr.bf16.mxu0 %v3010_v14 }
 0x12e   : > { %2739 = vmatpush3.bf16.msra.mxu1 %v3032_v29 }
 0x12f   : > { %2740 = vmatprep.subr.bf16.mxu1 %v3033_v30 }
 0x130   : > { %2711 = vmatpush3.bf16.msra.mxu0 %v3010_v14 }
 0x131   : > { %2712 = vmatprep.subr.bf16.mxu0 %v3011_v16 }
 0x132   : > { %2741 = vmatpush3.bf16.msra.mxu1 %v3033_v30  ;;  %v3025_v30 = vld [vmem:[#allocation2 + $0x10] sm:$0xff]  }
 0x133   : > { %2742 = vmatprep.subr.bf16.mxu1 %v3034_v35 }
 0x134   : > { %2713 = vmatpush3.bf16.msra.mxu0 %v3011_v16 }
 0x135   : > { %2714 = vmatprep.subr.bf16.mxu0 %v3012_v17 }
 0x136   : > { %2743 = vmatpush3.bf16.msra.mxu1 %v3034_v35  ;;  %v3030_v35 = vld [vmem:[#allocation2 + $0x38] sm:$0xff]  }
 0x137   : > { %2744 = vmatprep.subr.bf16.mxu1 %v3035_v43 }
 0x138   : > { %2715 = vmatpush3.bf16.msra.mxu0 %v3012_v17 }
 0x139   : > { %2716 = vmatprep.subr.bf16.mxu0 %v3013_v18 }
 0x13a   : > { %2745 = vmatpush3.bf16.msra.mxu1 %v3035_v43  ;;  %v3257_v43 = vmov 0  }
 0x13b   : > { %2746 = vmatprep.subr.bf16.mxu1 %v3036_v50  ;;  %3006 = vset.pattern.permute.xlu1 %v3257_v43 }
 0x13c   : > { %2717 = vmatpush3.bf16.msra.mxu0 %v3013_v18  ;;  %3005 = vset.pattern.permute.xlu0 %v3257_v43 }
 0x13d   : > { %2718 = vmatprep.subr.bf16.mxu0 %v3014_v19 }
 0x13e   : > { %2747 = vmatpush3.bf16.msra.mxu1 %v3036_v50 }
 0x13f   : > { %2748 = vmatprep.subr.bf16.mxu1 %v3037_v53 }
 0x140   : > { %2719 = vmatpush3.bf16.msra.mxu0 %v3014_v19 }
 0x142   : > { %2749 = vmatpush3.bf16.msra.mxu1 %v3037_v53 }
 0x143   : > { %2721 = vmatmul.mubr.bf16.vlgmr.msra.gmra.mxu0 %v3509_v20  ;;  %2750 = vmatprep.subr.bf16.mxu1 %v3038_v56 }
 0x144   : > { %2724 = vmatprep.mubr.bf16.mxu0 %v3512_v21 }
 0x146   : > { %2751 = vmatpush3.bf16.msra.mxu1 %v3038_v56 }
 0x149   : > { %2753 = vmatmul.mubr.bf16.vlgmr.msra.gmra.mxu1 %v3509_v20 }
 0x14a   : > { %2756 = vmatprep.mubr.bf16.mxu1 %v3512_v21 }
 0x14b   : > { %2725 = vmatmul.mubr.bf16.gmra.mxu0 %v3517_v22 }
 0x14c   : > { %2728 = vmatprep.mubr.bf16.mxu0 %v3520_v23 }
 0x151   : > { %2757 = vmatmul.mubr.bf16.gmra.mxu1 %v3517_v22 }
 0x152   : > { %2760 = vmatprep.mubr.bf16.mxu1 %v3520_v23 }
 0x153   : > { %2729 = vmatmul.mubr.bf16.gmra.mxu0 %v3525_v24 }
 0x154   : > { %2732 = vmatprep.mubr.bf16.mxu0 %v3528_v25 }
 0x159   : > { %2761 = vmatmul.mubr.bf16.gmra.mxu1 %v3525_v24 }
 0x15a   : > { %2764 = vmatprep.mubr.bf16.mxu1 %v3528_v25 }
 0x15b   : > { %2733 = vmatmul.mubr.bf16.gmra.mxu0 %v3533_v26 }
 0x15c   : > { %2784 = vmatprep.mubr.bf16.mxu0 %v3023_v27 }
 0x161   : > { %2765 = vmatmul.mubr.bf16.gmra.mxu1 %v3533_v26  ;;  %v3024_v26 = vld [vmem:[#allocation2 + $0x8] sm:$0xff]  }
 0x203   : > { %v2722_v31 = vpop.f32.mrf.mxu0 }
 0x204   : > { %v938_v34 = vadd.f32 %v2722_v31, %v3548_v32  ;;  %v3026_v31 = vld [vmem:[#allocation2 + $0x18] sm:$0xff]  }
 0x205   : > { %v929_v33 = vpop.f32.mrf.mxu0 }
 0x206   : > { %v930_v37 = vadd.f32 %v3548_v32, %v929_v33  ;;  %v994_v40 = vmax.f32 %v938_v34, 0.0  ;;  %v3028_v33 = vld [vmem:[#allocation2 + $0x28] sm:$0xff]   ;;  %v3029_v34 = vld [vmem:[#allocation2 + $0x30] sm:$0xff]  }
 0x207   : > { %v2723_v36 = vpop.f32.mrf.mxu0 }
 0x208   : > { %v941_v38 = vadd.f32 %v2723_v36, %v3548_v32  ;;  %v992_v45 = vmax.f32 %v930_v37, 0.0 }
 0x209   : > { %v932_v39 = vpop.f32.mrf.mxu0  ;;  %v2754_v53 = vpop.f32.mrf.mxu1 }
 0x20a   : > { %v995_v41 = vmax.f32 %v941_v38, 0.0  ;;  %v933_v42 = vadd.f32 %v3548_v32, %v932_v39 }
 0x20b   : > { %v2726_v44 = vpop.f32.mrf.mxu0 }
 0x20c   : > { %v3560_v46 = vpack.c.bf16 %v995_v41, %v994_v40  ;;  %v993_v47 = vmax.f32 %v933_v42, 0.0  ;;  %v954_v20 = vadd.f32 %v2726_v44, %v3548_v32 }
 0x20d   : > { %v3562_v48 = vpop.f32.mrf.mxu0 }
 0x20e   : > { %v3564_v49 = vpack.c.bf16 %v993_v47, %v992_v45  ;;  %v998_v22 = vmax.f32 %v954_v20, 0.0  ;;  %v946_v24 = vadd.f32 %v3548_v32, %v3562_v48 }
 0x20f   : > { %v2727_v51 = vpop.f32.mrf.mxu0 }
 0x210   : > { %v957_v18 = vadd.f32 %v2727_v51, %v3548_v32  ;;  %v996_v28 = vmax.f32 %v946_v24, 0.0 }
 0x211   : > { %v948_v52 = vpop.f32.mrf.mxu0 }
 0x212   : > { %v999_v21 = vmax.f32 %v957_v18, 0.0  ;;  %v949_v27 = vadd.f32 %v3548_v32, %v948_v52 }
 0x213   : > { %v2730_v54 = vpop.f32.mrf.mxu0 }
 0x214   : > { %v970_v10 = vadd.f32 %v2730_v54, %v3548_v32  ;;  %v1011_v23 = vpack.c.bf16 %v999_v21, %v998_v22  ;;  %v997_v25 = vmax.f32 %v949_v27, 0.0  ;;  %v1121_v54 = vpop.f32.mrf.mxu1 }
 0x215   : > { %v961_v55 = vpop.f32.mrf.mxu0 }
 0x216   : > { %v1002_v12 = vmax.f32 %v970_v10, 0.0  ;;  %v962_v15 = vadd.f32 %v3548_v32, %v961_v55  ;;  %v1010_v29 = vpack.c.bf16 %v997_v25, %v996_v28  ;;  %v2755_v55 = vpop.f32.mrf.mxu1 }
 0x217   : > { %v2731_v57 = vpop.f32.mrf.mxu0 }
 0x218   : > { %v973_v8 = vadd.f32 %v2731_v57, %v3548_v32  ;;  %v1000_v17 = vmax.f32 %v962_v15, 0.0  ;;  %v1124_v56 = vpop.f32.mrf.mxu1 }
 0x219   : > { %v964_v58 = vpop.f32.mrf.mxu0 }
 0x21a   : > { %v1003_v11 = vmax.f32 %v973_v8, 0.0  ;;  %v965_v14 = vadd.f32 %v3548_v32, %v964_v58  ;;  %v2758_v57 = vpop.f32.mrf.mxu1 }
 0x21b   : > { %v2734_v59 = vpop.f32.mrf.mxu0 }
 0x21c   : > { %v986_v61 = vadd.f32 %v2734_v59, %v3548_v32  ;;  %v1013_v13 = vpack.c.bf16 %v1003_v11, %v1002_v12  ;;  %v1001_v16 = vmax.f32 %v965_v14, 0.0  ;;  %v1137_v58 = vpop.f32.mrf.mxu1 }
 0x21d   : > { %v977_v60 = vpop.f32.mrf.mxu0 }
 0x21e   : > { %v978_v63 = vadd.f32 %v3548_v32, %v977_v60  ;;  %v1006_v2 = vmax.f32 %v986_v61, 0.0  ;;  %v1012_v19 = vpack.c.bf16 %v1001_v16, %v1000_v17  ;;  %v2759_v59 = vpop.f32.mrf.mxu1 }
 0x21f   : > { %v2735_v62 = vpop.f32.mrf.mxu0 }
 0x220   : > { %v989_v0 = vadd.f32 %v2735_v62, %v3548_v32  ;;  %v1004_v5 = vmax.f32 %v978_v63, 0.0  ;;  %v1140_v60 = vpop.f32.mrf.mxu1 }
 0x221   : > { %v980_v1 = vpop.f32.mrf.mxu0 }
 0x222   : > { %v1007_v3 = vmax.f32 %v989_v0, 0.0  ;;  %v981_v4 = vadd.f32 %v3548_v32, %v980_v1  ;;  %v3027_v32 = vld [vmem:[#allocation2 + $0x20] sm:$0xff]   ;;  %v2762_v61 = vpop.f32.mrf.mxu1 }
 0x223   : > { %v2480_v1 = vld [vmem:[%s4016_s5] ss:$0 sm:$0xff] }
 0x224   : > { %v1015_v6 = vpack.c.bf16 %v1007_v3, %v1006_v2  ;;  %v1005_v7 = vmax.f32 %v981_v4, 0.0  ;;  %v1153_v62 = vpop.f32.mrf.mxu1  ;;  %v1146_v17 = vadd.f32 %v2758_v57, %v2480_v1  ;;  %v1149_v18 = vadd.f32 %v2759_v59, %v2480_v1 }
 0x225   : > { %v1138_v20 = vadd.f32 %v2480_v1, %v1137_v58  ;;  %v1141_v22 = vadd.f32 %v2480_v1, %v1140_v60  ;;  %v1133_v27 = vadd.f32 %v2755_v55, %v2480_v1  ;;  %v1122_v25 = vadd.f32 %v2480_v1, %v1121_v54  ;;  %v3658_v54 = vld [vmem:[#allocation3 + $0x8] sm:$0xff]  ;;  %v3663_v58 = vld [vmem:[#allocation3 + $0x20] sm:$0xff]  ;;  %v1360_v60 = vld [vmem:[#allocation3 + $0x38] sm:$0xff] }
 0x226   : > { %v1014_v9 = vpack.c.bf16 %v1005_v7, %v1004_v5  ;;  %2768 = vmatprep.subr.bf16.mxu0 %v1015_v6  ;;  %v2763_v63 = vpop.f32.mrf.mxu1  ;;  %v1162_v7 = vadd.f32 %v2762_v61, %v2480_v1  ;;  %v1187_v21 = vpack.c.bf16 %v1149_v18, %v1146_v17 }
 0x227   : > { %2769 = vmatpush3.bf16.xpose.msra.mxu0 %v1015_v6  ;;  %v1165_v8 = vadd.f32 %v2763_v63, %v2480_v1  ;;  %v1186_v24 = vpack.c.bf16 %v1141_v22, %v1138_v20  ;;  %v3669_v63 = vld [vmem:[#allocation3 + $0x30] sm:$0xff] }
 0x228   : > { %2770 = vmatprep.subr.bf16.mxu0 %v1014_v9  ;;  %v1156_v0 = vpop.f32.mrf.mxu1 }
 0x229   : > { %v1189_v14 = vpack.c.bf16 %v1165_v8, %v1162_v7  ;;  %v1157_v15 = vadd.f32 %v2480_v1, %v1156_v0  ;;  %v3685_v8 = vld [vmem:[#allocation3 + $0x58] sm:$0xff] }
 0x22a   : > { %v2766_v2 = vpop.f32.mrf.mxu1 }
 0x22b   : > { %v1178_v4 = vadd.f32 %v2766_v2, %v2480_v1  ;;  %v3673_v2 = vld [vmem:[#allocation3 + $0x28] sm:$0xff] }
 0x22c   : > { %v1169_v3 = vpop.f32.mrf.mxu1 }
 0x22e   : > { %v2767_v5 = vpop.f32.mrf.mxu1 }
 0x22f   : > { %2771 = vmatpush3.bf16.xpose.msra.mxu0 %v1014_v9  ;;  %v1181_v6 = vadd.f32 %v2767_v5, %v2480_v1  ;;  %v1170_v9 = vadd.f32 %v2480_v1, %v1169_v3  ;;  %v3679_v5 = vld [vmem:[#allocation3 + $0x40] sm:$0xff] }
 0x230   : > { %2772 = vmatprep.subr.bf16.mxu0 %v1013_v13  ;;  %v1172_v11 = vpop.f32.mrf.mxu1 }
 0x231   : > { %v1191_v10 = vpack.c.bf16 %v1181_v6, %v1178_v4  ;;  %v1173_v12 = vadd.f32 %v2480_v1, %v1172_v11  ;;  %v3691_v11 = vld [vmem:[#allocation3 + $0x50] sm:$0xff] }
 0x233   : > { %2800 = vmatprep.subr.bf16.mxu1 %v1191_v10  ;;  %v1190_v16 = vpack.c.bf16 %v1173_v12, %v1170_v9 }
 0x234   : > { %2801 = vmatpush3.bf16.msra.mxu1 %v1191_v10 }
 0x235   : > { %2802 = vmatprep.subr.bf16.mxu1 %v1190_v16 }
 0x237   : > { %2773 = vmatpush3.bf16.xpose.msra.mxu0 %v1013_v13  ;;  %v1154_v13 = vadd.f32 %v2480_v1, %v1153_v62 }
 0x238   : > { %2774 = vmatprep.subr.bf16.mxu0 %v1012_v19  ;;  %2803 = vmatpush3.bf16.msra.mxu1 %v1190_v16 }
 0x239   : > { %2804 = vmatprep.subr.bf16.mxu1 %v1189_v14 }
 0x23c   : > { %2805 = vmatpush3.bf16.msra.mxu1 %v1189_v14 }
 0x23f   : > { %2775 = vmatpush3.bf16.xpose.msra.mxu0 %v1012_v19  ;;  %v1188_v19 = vpack.c.bf16 %v1157_v15, %v1154_v13  ;;  %v3697_v15 = vld [vmem:[#allocation3 + $0x48] sm:$0xff] }
 0x240   : > { %2776 = vmatprep.subr.bf16.mxu0 %v1011_v23 }
 0x241   : > { %2806 = vmatprep.subr.bf16.mxu1 %v1188_v19 }
 0x242   : > { %2807 = vmatpush3.bf16.msra.mxu1 %v1188_v19  ;;  %v3703_v19 = vld [vmem:[#allocation3 + $0x60] sm:$0xff] }
 0x243   : > { %2808 = vmatprep.subr.bf16.mxu1 %v1187_v21 }
 0x246   : > { %2809 = vmatpush3.bf16.msra.mxu1 %v1187_v21 }
 0x247   : > { %2777 = vmatpush3.bf16.xpose.msra.mxu0 %v1011_v23  ;;  %v1130_v23 = vadd.f32 %v2754_v53, %v2480_v1  ;;  %2810 = vmatprep.subr.bf16.mxu1 %v1186_v24 }
 0x248   : > { %2778 = vmatprep.subr.bf16.mxu0 %v1010_v29 }
 0x249   : > { %v1185_v28 = vpack.c.bf16 %v1133_v27, %v1130_v23  ;;  %v3708_v23 = vld [vmem:[#allocation3 + $0x78] sm:$0xff] }
 0x24a   : > { %2811 = vmatpush3.bf16.msra.mxu1 %v1186_v24 }
 0x24b   : > { %2812 = vmatprep.subr.bf16.mxu1 %v1185_v28 }
 0x24e   : > { %2813 = vmatpush3.bf16.msra.mxu1 %v1185_v28 }
 0x24f   : > { %2779 = vmatpush3.bf16.xpose.msra.mxu0 %v1010_v29  ;;  %v1125_v29 = vadd.f32 %v2480_v1, %v1124_v56 }
 0x250   : > { %2780 = vmatprep.subr.bf16.mxu0 %v3560_v46 }
 0x257   : > { %2781 = vmatpush3.bf16.xpose.msra.mxu0 %v3560_v46 }
 0x258   : > { %2782 = vmatprep.subr.bf16.mxu0 %v3564_v49 }
 0x25f   : > { %2783 = vmatpush3.bf16.xpose.msra.mxu0 %v3564_v49 }
 0x266   : > { %2785 = vmatmul.mubr.bf16.vlgmr.msra.gmra.mxu0 %v3024_v26  ;;  %v1184_v26 = vpack.c.bf16 %v1125_v29, %v1122_v25  ;;  %v3715_v29 = vld [vmem:[#allocation3 + $0x70] sm:$0xff] }
 0x267   : > { %2788 = vmatprep.mubr.bf16.mxu0 %v3025_v30  ;;  %v3650_v30 = vld [vmem:[#allocation3 + $0x10] sm:$0xff] }
 0x268   : > { %2814 = vmatprep.subr.bf16.mxu1 %v1184_v26 }
 0x269   : > { %2815 = vmatpush3.bf16.msra.mxu1 %v1184_v26 }
 0x26e   : > { %2789 = vmatmul.mubr.bf16.gmra.mxu0 %v3026_v31 }
 0x26f   : > { %2792 = vmatprep.mubr.bf16.mxu0 %v3027_v32  ;;  %v1353_v32 = vld [vmem:[#allocation3] sm:$0xff] }
 0x276   : > { %2793 = vmatmul.mubr.bf16.gmra.mxu0 %v3028_v33 }
 0x277   : > { %2796 = vmatprep.mubr.bf16.mxu0 %v3029_v34 }
 0x27e   : > { %2797 = vmatmul.mubr.bf16.gmra.mxu0 %v3030_v35  ;;  %v1356_v35 = vld [vmem:[#allocation3 + $0x18] sm:$0xff] }
 0x326   : > { %v3599_v36 = vpop.f32.mrf.mxu0 }
 0x327   : > { %1373 = vmax.xlane.f32.xlu1 %v3599_v36 }
 0x328   : > { %v3602_v37 = vpop.f32.mrf.mxu0 }
 0x329   : > { %1369 = vmax.xlane.f32.xlu0 %v3602_v37 }
 0x32a   : > { %v3605_v38 = vpop.f32.mrf.mxu0 }
 0x32b   : > { %1375 = vmax.xlane.f32.xlu1 %v3605_v38 }
 0x32c   : > { %v3608_v39 = vpop.f32.mrf.mxu0 }
 0x32d   : > { %1371 = vmax.xlane.f32.xlu0 %v3608_v39 }
 0x32e   : > { %v3611_v40 = vpop.f32.mrf.mxu0 }
 0x330   : > { %v3613_v41 = vpop.f32.mrf.mxu0 }
 0x331   : > { %1377 = vmax.xlane.f32.xlu0 %v3613_v41 }
 0x332   : > { %v3616_v42 = vpop.f32.mrf.mxu0 }
 0x333   : > { %1383 = vmax.xlane.f32.xlu1 %v3616_v42 }
 0x334   : > { %v3619_v44 = vpop.f32.mrf.mxu0 }
 0x335   : > { %1381 = vmax.xlane.f32.xlu0 %v3611_v40 }
 0x336   : > { %v3622_v45 = vpop.f32.mrf.mxu0 }
 0x337   : > { %1379 = vmax.xlane.f32.xlu1 %v3619_v44 }
 0x338   : > { %v3625_v46 = vpop.f32.mrf.mxu0 }
 0x339   : > { %1385 = vmax.xlane.f32.xlu0 %v3625_v46 }
 0x33a   : > { %v3628_v47 = vpop.f32.mrf.mxu0 }
 0x33b   : > { %1391 = vmax.xlane.f32.xlu1 %v3628_v47 }
 0x33c   : > { %v3631_v48 = vpop.f32.mrf.mxu0 }
 0x33d   : > { %1389 = vmax.xlane.f32.xlu0 %v3622_v45 }
 0x33e   : > { %v3634_v49 = vpop.f32.mrf.mxu0 }
 0x33f   : > { %1387 = vmax.xlane.f32.xlu1 %v3631_v48 }
 0x340   : > { %v3637_v50 = vpop.f32.mrf.mxu0 }
 0x341   : > { %1393 = vmax.xlane.f32.xlu0 %v3637_v50 }
 0x342   : > { %v3640_v51 = vpop.f32.mrf.mxu0 }
 0x343   : > { %1399 = vmax.xlane.f32.xlu1 %v3640_v51 }
 0x344   : > { %v3644_v52 = vpop.f32.mrf.mxu0 }
 0x345   : > { %1397 = vmax.xlane.f32.xlu0 %v3634_v49 }
 0x347   : > { %1395 = vmax.xlane.f32.xlu1 %v3644_v52 }
 0x3b0   : > { %v1374_v31 = vpop.xlane.xlu1 %1373 }
 0x3b1   : > { %v3653_v33 = vmax.f32 %v3650_v30, %v1374_v31 }
 0x3b2   : > { %v1370_v34 = vpop.xlane.xlu0 %1369 }
 0x3b3   : > { %1941 = vst.msk [vmem:[#allocation3 + $0x10] sm:$0xff] %vm1673_vm1, %v3653_v33  ;;  %v1401_v43 = vmax.f32 %v1353_v32, %v1370_v34  ;;  %1477 = vperm.xlu1 %3006, %v3653_v33   ;;  %v1366_v34 = vld [vmem:[#allocation3 + $0x68] sm:$0xff] }
 0x3b4   : > { %v1376_v53 = vpop.xlane.xlu1 %1375 }
 0x3b5   : > { %1939 = vst.msk [vmem:[#allocation3] sm:$0xff] %vm1673_vm1, %v1401_v43  ;;  %v1404_v55 = vmax.f32 %v1356_v35, %v1376_v53  ;;  %1467 = vperm.xlu0 %3005, %v1401_v43   ;;  %v1417_v12 = vsub.f32 %v1353_v32, %v1401_v43 }
 0x3b6   : > { %v1372_v56 = vpop.xlane.xlu0 %1371 }
 0x3b7   : > { %1942 = vst.msk [vmem:[#allocation3 + $0x18] sm:$0xff] %vm1673_vm1, %v1404_v55  ;;  %v1402_v57 = vmax.f32 %v3658_v54, %v1372_v56  ;;  %1482 = vperm.xlu1 %3006, %v1404_v55   ;;  %v1420_v17 = vsub.f32 %v1356_v35, %v1404_v55  ;;  %v1433_v20 = vmul.f32 1.442695, %v1417_v12  ;;  %v1419_v35 = vsub.f32 %v3650_v30, %v3653_v33 }
 0x3b9   : > { %1940 = vst.msk [vmem:[#allocation3 + $0x8] sm:$0xff] %vm1673_vm1, %v1402_v57  ;;  %v1418_v27 = vsub.f32 %v3658_v54, %v1402_v57  ;;  %v1439_v25 = vmul.f32 1.442695, %v1420_v17  ;;  %3039 = vpow2.f32 %v1433_v20  ;;  %v1437_v33 = vmul.f32 1.442695, %v1419_v35 }
 0x3ba   : > { %v1378_v59 = vpop.xlane.xlu0 %1377 }
 0x3bb   : > { %v3667_v61 = vmax.f32 %v3663_v58, %v1378_v59  ;;  %1472 = vperm.xlu1 %3006, %v1402_v57   ;;  %v1435_v43 = vmul.f32 1.442695, %v1418_v27  ;;  %3041 = vpow2.f32 %v1439_v25 }
 0x3bc   : > { %v1384_v62 = vpop.xlane.xlu1 %1383 }
 0x3bd   : > { %1943 = vst.msk [vmem:[#allocation3 + $0x20] sm:$0xff] %vm1673_vm1, %v3667_v61  ;;  %v1408_v0 = vmax.f32 %v1360_v60, %v1384_v62  ;;  %3043 = vpow2.f32 %v1435_v43 }
 0x3be   : > { %v1382_v1 = vpop.xlane.xlu0 %1381 }
 0x3bf   : > { %1946 = vst.msk [vmem:[#allocation3 + $0x38] sm:$0xff] %vm1673_vm1, %v1408_v0  ;;  %v3677_v3 = vmax.f32 %v3669_v63, %v1382_v1  ;;  %v1424_v26 = vsub.f32 %v1360_v60, %v1408_v0  ;;  %v1421_v60 = vsub.f32 %v3663_v58, %v3667_v61 }
 0x3c0   : > { %v1380_v4 = vpop.xlane.xlu1 %1379 }
 0x3c1   : > { %1945 = vst.msk [vmem:[#allocation3 + $0x30] sm:$0xff] %vm1673_vm1, %v3677_v3  ;;  %v1406_v6 = vmax.f32 %v3673_v2, %v1380_v4  ;;  %1497 = vperm.xlu1 %3006, %v3677_v3   ;;  %v1447_v56 = vmul.f32 1.442695, %v1424_v26  ;;  %v1441_v1 = vmul.f32 1.442695, %v1421_v60 }
 0x3c2   : > { %v1386_v7 = vpop.xlane.xlu0 %1385 }
 0x3c3   : > { %1944 = vst.msk [vmem:[#allocation3 + $0x28] sm:$0xff] %vm1673_vm1, %v1406_v6  ;;  %v3689_v9 = vmax.f32 %v3679_v5, %v1386_v7  ;;  %v1422_v57 = vsub.f32 %v3673_v2, %v1406_v6  ;;  %3045 = vpow2.f32 %v1447_v56  ;;  %v1423_v2 = vsub.f32 %v3669_v63, %v3677_v3 }
 0x3c4   : > { %v1392_v10 = vpop.xlane.xlu1 %1391  ;;  %3047 = vpow2.f32 %v1437_v33 }
 0x3c5   : > { %1947 = vst.msk [vmem:[#allocation3 + $0x40] sm:$0xff] %vm1673_vm1, %v3689_v9  ;;  %v1412_v13 = vmax.f32 %v3685_v8, %v1392_v10  ;;  %1487 = vperm.xlu1 %3006, %v3667_v61   ;;  %v1443_v62 = vmul.f32 1.442695, %v1422_v57  ;;  %v1425_v10 = vsub.f32 %v3679_v5, %v3689_v9 }
 0x3c6   : > { %v1390_v14 = vpop.xlane.xlu0 %1389  ;;  %v3747_v61 = vpop.eup %3039 }
 0x3c7   : > { %1950 = vst.msk [vmem:[#allocation3 + $0x58] sm:$0xff] %vm1673_vm1, %v1412_v13  ;;  %v3701_v16 = vmax.f32 %v3691_v11, %v1390_v14  ;;  %3049 = vpow2.f32 %v1443_v62 }
 0x3c8   : > { %v1388_v18 = vpop.xlane.xlu1 %1387  ;;  %3051 = vpow2.f32 %v1441_v1 }
 0x3c9   : > { %1949 = vst.msk [vmem:[#allocation3 + $0x50] sm:$0xff] %vm1673_vm1, %v3701_v16  ;;  %v1410_v21 = vmax.f32 %v3697_v15, %v1388_v18  ;;  %1492 = vperm.xlu1 %3006, %v1406_v6   ;;  %v1445_v6 = vmul.f32 1.442695, %v1423_v2  ;;  %v1427_v7 = vsub.f32 %v3691_v11, %v3701_v16 }
 0x3ca   : > { %v1394_v22 = vpop.xlane.xlu0 %1393 }
 0x3cb   : > { %1948 = vst.msk [vmem:[#allocation3 + $0x48] sm:$0xff] %vm1673_vm1, %v1410_v21  ;;  %v3713_v24 = vmax.f32 %v3703_v19, %v1394_v22  ;;  %1512 = vperm.xlu0 %3005, %v1410_v21   ;;  %v1426_v58 = vsub.f32 %v3697_v15, %v1410_v21  ;;  %v1453_v12 = vmul.f32 1.442695, %v1427_v7  ;;  %v1449_v15 = vmul.f32 1.442695, %v1425_v10 }
 0x3cc   : > { %v1400_v28 = vpop.xlane.xlu1 %1399 }
 0x3cd   : > { %1951 = vst.msk [vmem:[#allocation3 + $0x60] sm:$0xff] %vm1673_vm1, %v3713_v24  ;;  %v3720_v31 = vmax.f32 %v3708_v23, %v1400_v28  ;;  %1502 = vperm.xlu1 %3006, %v1408_v0   ;;  %v1428_v0 = vsub.f32 %v3685_v8, %v1412_v13  ;;  %v3752_v8 = vpop.eup %3041  ;;  %v1451_v63 = vmul.f32 1.442695, %v1426_v58 }
 0x3ce   : > { %v1398_v32 = vpop.xlane.xlu0 %1397 }
 0x3cf   : > { %v1432_v53 = vsub.f32 %v3708_v23, %v3720_v31  ;;  %1954 = vst.msk [vmem:[#allocation3 + $0x78] sm:$0xff] %vm1673_vm1, %v3720_v31  ;;  %v3729_v54 = vmax.f32 %v3715_v29, %v1398_v32  ;;  %1522 = vperm.xlu0 %3005, %v1412_v13   ;;  %v1455_v4 = vmul.f32 1.442695, %v1428_v0  ;;  %v3758_v13 = vpop.eup %3043 }
 0x3d0   : > { %v1396_v55 = vpop.xlane.xlu1 %1395  ;;  %v3761_v14 = vpop.eup %3045 }
 0x3d1   : > { %v1431_v59 = vsub.f32 %v3715_v29, %v3729_v54  ;;  %1953 = vst.msk [vmem:[#allocation3 + $0x70] sm:$0xff] %vm1673_vm1, %v3729_v54  ;;  %v1414_v30 = vmax.f32 %v1366_v34, %v1396_v55  ;;  %1507 = vperm.xlu1 %3006, %v3689_v9   ;;  %3053 = vpow2.f32 %v1455_v4  ;;  %v3766_v17 = vpop.eup %3047 }
 0x3d2   : > { %3055 = vpow2.f32 %v1445_v6 }
 0x3d3   : > { %1952 = vst.msk [vmem:[#allocation3 + $0x68] sm:$0xff] %vm1673_vm1, %v1414_v30  ;;  %1532 = vperm.xlu0 %3005, %v1414_v30   ;;  %v1430_v3 = vsub.f32 %v1366_v34, %v1414_v30  ;;  %3057 = vpow2.f32 %v1451_v63 }
 0x3d4   : > { %3059 = vpow2.f32 %v1453_v12  ;;  %v3769_v5 = vpop.eup %3049 }
 0x3d5   : > { %1517 = vperm.xlu1 %3006, %v3701_v16   ;;  %v1459_v11 = vmul.f32 1.442695, %v1430_v3  ;;  %v1429_v16 = vsub.f32 %v3703_v19, %v3713_v24  ;;  %v3772_v18 = vpop.eup %3051 }
 0x3d7   : > { %1542 = vperm.xlu0 %3005, %v3720_v31   ;;  %3061 = vpow2.f32 %v1459_v11  ;;  %v1457_v9 = vmul.f32 1.442695, %v1429_v16 }
 0x3d8   : > { %3063 = vpow2.f32 %v1449_v15 }
 0x3d9   : > { %1527 = vperm.xlu1 %3006, %v3713_v24   ;;  %3065 = vpow2.f32 %v1457_v9 }
 0x3db   : > { %1708 = vperm.xlu0 %3005, %v3747_v61  }
 0x3dd   : > { %1537 = vperm.xlu1 %3006, %v3729_v54  }
 0x3de   : > { %v3775_v20 = vpop.eup %3053 }
 0x3df   : > { %1723 = vperm.xlu0 %3005, %v3752_v8   ;;  %v3778_v19 = vpop.eup %3055 }
 0x3e0   : > { %v3781_v21 = vpop.eup %3057 }
 0x3e1   : > { %1713 = vperm.xlu1 %3006, %v3758_v13   ;;  %v3784_v22 = vpop.eup %3059 }
 0x3e3   : > { %1743 = vperm.xlu0 %3005, %v3761_v14  }
 0x3e4   : > { %v3787_v27 = vpop.eup %3061 }
 0x3e5   : > { %1718 = vperm.xlu1 %3006, %v3766_v17   ;;  %v3790_v24 = vpop.eup %3063 }
 0x3e6   : > { %v3793_v25 = vpop.eup %3065 }
 0x3e7   : > { %1733 = vperm.xlu0 %3005, %v3769_v5  }
 0x3e9   : > { %1728 = vperm.xlu1 %3006, %v3772_v18  }
 0x3eb   : > { %1763 = vperm.xlu0 %3005, %v3775_v20  }
 0x3ed   : > { %1738 = vperm.xlu1 %3006, %v3778_v19  }
 0x3ef   : > { %1753 = vperm.xlu0 %3005, %v3781_v21  }
 0x3f1   : > { %1758 = vperm.xlu1 %3006, %v3784_v22  }
 0x3f3   : > { %1773 = vperm.xlu0 %3005, %v3787_v27  }
 0x3f5   : > { %1748 = vperm.xlu1 %3006, %v3790_v24  }
 0x3f9   : > { %1768 = vperm.xlu1 %3006, %v3793_v25  }
 0x42e   : > { %v1478_v28 = vpop.permute.xlu1 %1477 }
 0x42f   : > { %v1547_v26 = vsub.f32 %v3599_v36, %v1478_v28 }
 0x430   : > { %v1468_v32 = vpop.permute.xlu0 %1467 }
 0x431   : > { %v1565_v34 = vmul.f32 1.442695, %v1547_v26  ;;  %v1545_v35 = vsub.f32 %v3602_v37, %v1468_v32 }
 0x432   : > { %v1483_v43 = vpop.permute.xlu1 %1482 }
 0x433   : > { %3067 = vpow2.f32 %v1565_v34  ;;  %v1561_v55 = vmul.f32 1.442695, %v1545_v35  ;;  %v1548_v56 = vsub.f32 %v3605_v38, %v1483_v43 }
 0x435   : > { %3069 = vpow2.f32 %v1561_v55  ;;  %v1567_v57 = vmul.f32 1.442695, %v1548_v56 }
 0x436   : > { %v1473_v30 = vpop.permute.xlu1 %1472 }
 0x437   : > { %v1546_v33 = vsub.f32 %v3608_v39, %v1473_v30  ;;  %3071 = vpow2.f32 %v1567_v57 }
 0x439   : > { %v1563_v60 = vmul.f32 1.442695, %v1546_v33 }
 0x43b   : > { %3073 = vpow2.f32 %v1563_v60 }
 0x43c   : > { %v1498_v62 = vpop.permute.xlu1 %1497 }
 0x43d   : > { %v1551_v36 = vsub.f32 %v3611_v40, %v1498_v62 }
 0x43f   : > { %v1573_v0 = vmul.f32 1.442695, %v1551_v36 }
 0x440   : > { %v3068_v1 = vpop.eup %3067  ;;  %v1488_v2 = vpop.permute.xlu1 %1487 }
 0x441   : > { %3075 = vpow2.f32 %v1573_v0  ;;  %v1549_v37 = vsub.f32 %v3613_v41, %v1488_v2  ;;  %1629 = vadd.xlane.f32.xlu0 %v3068_v1 }
 0x442   : > { %v3070_v4 = vpop.eup %3069 }
 0x443   : > { %v1569_v38 = vmul.f32 1.442695, %v1549_v37  ;;  %1625 = vadd.xlane.f32.xlu1 %v3070_v4 }
 0x444   : > { %v1493_v58 = vpop.permute.xlu1 %1492  ;;  %v3072_v6 = vpop.eup %3071 }
 0x445   : > { %3077 = vpow2.f32 %v1569_v38  ;;  %v1550_v39 = vsub.f32 %v3619_v44, %v1493_v58  ;;  %v1803_v15 = vpack.c.bf16 %v3072_v6, %v3068_v1 }
 0x446   : > { %v1513_v7 = vpop.permute.xlu0 %1512 }
 0x447   : > { %v1571_v63 = vmul.f32 1.442695, %v1550_v39  ;;  %1631 = vadd.xlane.f32.xlu1 %v3072_v6  ;;  %v1554_v40 = vsub.f32 %v3631_v48, %v1513_v7 }
 0x448   : > { %v3074_v3 = vpop.eup %3073  ;;  %v1503_v10 = vpop.permute.xlu1 %1502 }
 0x449   : > { %3079 = vpow2.f32 %v1571_v63  ;;  %v1552_v12 = vsub.f32 %v3616_v42, %v1503_v10  ;;  %1627 = vadd.xlane.f32.xlu0 %v3074_v3  ;;  %v1802_v41 = vpack.c.bf16 %v3074_v3, %v3070_v4  ;;  %v1579_v9 = vmul.f32 1.442695, %v1554_v40 }
 0x44a   : > { %v1523_v11 = vpop.permute.xlu0 %1522 }
 0x44b   : > { %v1575_v16 = vmul.f32 1.442695, %v1552_v12  ;;  %2816 = vmatprep.mubr.bf16.mxu1 %v1802_v41  ;;  %v1556_v44 = vsub.f32 %v3628_v47, %v1523_v11  ;;  %v1461_v12 = vmul.f32 1.442695, %v1431_v59  ;;  %v1463_v41 = vmul.f32 1.442695, %v1432_v53 }
 0x44c   : > { %2817 = vmatmul.mubr.bf16.vlgmr.msra.gmra.mxu1 %v1803_v15  ;;  %v1508_v28 = vpop.permute.xlu1 %1507 }
 0x44d   : > { %3081 = vpow2.f32 %v1575_v16  ;;  %v1553_v26 = vsub.f32 %v3625_v46, %v1508_v28  ;;  %v1583_v42 = vmul.f32 1.442695, %v1556_v44 }
 0x44e   : > { %v3076_v32 = vpop.eup %3075  ;;  %v1533_v48 = vpop.permute.xlu0 %1532  ;;  %3083 = vpow2.f32 %v1579_v9 }
 0x44f   : > { %v1577_v34 = vmul.f32 1.442695, %v1553_v26  ;;  %1637 = vadd.xlane.f32.xlu0 %v3076_v32  ;;  %v1558_v35 = vsub.f32 %v3644_v52, %v1533_v48 }
 0x450   : > { %v1518_v43 = vpop.permute.xlu1 %1517 }
 0x451   : > { %3085 = vpow2.f32 %v1577_v34  ;;  %v1555_v55 = vsub.f32 %v3622_v45, %v1518_v43  ;;  %v1587_v30 = vmul.f32 1.442695, %v1558_v35  ;;  %v1595_v34 = vld [vmem:[#allocation4 + $0x10] sm:$0xff]  ;;  %v1593_v35 = vld [vmem:[#allocation4] sm:$0xff] }
 0x452   : > { %v3078_v56 = vpop.eup %3077  ;;  %v1543_v57 = vpop.permute.xlu0 %1542  ;;  %3087 = vpow2.f32 %v1583_v42  ;;  %v1611_v43 = vmul.f32 %v3766_v17, %v1595_v34 }
 0x453   : > { %v1581_v47 = vmul.f32 1.442695, %v1555_v55  ;;  %1633 = vadd.xlane.f32.xlu0 %v3078_v56  ;;  %v1560_v46 = vsub.f32 %v3640_v51, %v1543_v57  ;;  %v1609_v57 = vmul.f32 %v3747_v61, %v1593_v35 }
 0x454   : > { %v1528_v33 = vpop.permute.xlu1 %1527 }
 0x455   : > { %3089 = vpow2.f32 %v1581_v47  ;;  %v1557_v60 = vsub.f32 %v3637_v50, %v1528_v33  ;;  %v1591_v52 = vmul.f32 1.442695, %v1560_v46  ;;  %v1594_v33 = vld [vmem:[#allocation4 + $0x8] sm:$0xff] }
 0x456   : > { %v3080_v62 = vpop.eup %3079  ;;  %3091 = vpow2.f32 %v1587_v30  ;;  %v3824_v16 = vpop.permute.xlu0 %1708  ;;  %v1596_v30 = vld [vmem:[#allocation4 + $0x18] sm:$0xff] }
 0x457   : > { %v1585_v36 = vmul.f32 1.442695, %v1557_v60  ;;  %v1804_v0 = vpack.c.bf16 %v3080_v62, %v3078_v56  ;;  %v1612_v60 = vmul.f32 %v3752_v8, %v1596_v30 }
 0x458   : > { %v1538_v1 = vpop.permute.xlu1 %1537 }
 0x459   : > { %3093 = vpow2.f32 %v1585_v36  ;;  %v1559_v45 = vsub.f32 %v3634_v49, %v1538_v1  ;;  %2820 = vmatprep.mubr.bf16.mxu1 %v1804_v0  ;;  %v1610_v0 = vmul.f32 %v3758_v13, %v1594_v33  ;;  %v1599_v1 = vld [vmem:[#allocation4 + $0x30] sm:$0xff]  ;;  %v1600_v13 = vld [vmem:[#allocation4 + $0x38] sm:$0xff] }
 0x45a   : > { %v3082_v2 = vpop.eup %3081  ;;  %3095 = vpow2.f32 %v1591_v52  ;;  %v3828_v54 = vpop.permute.xlu0 %1723  ;;  %v1615_v61 = vmul.f32 %v3778_v19, %v1599_v1 }
 0x45b   : > { %v1589_v37 = vmul.f32 1.442695, %v1559_v45  ;;  %1639 = vadd.xlane.f32.xlu1 %v3082_v2  ;;  %v1805_v4 = vpack.c.bf16 %v3082_v2, %v3076_v32  ;;  %v3084_v51 = vpop.eup %3083  ;;  %v1597_v2 = vld [vmem:[#allocation4 + $0x20] sm:$0xff] }
 0x45c   : > { %v3826_v29 = vpop.permute.xlu1 %1713  ;;  %v1613_v8 = vmul.f32 %v3772_v18, %v1597_v2  ;;  %v1693_v2 = vld [vmem:[#allocation5 + $0x18] sm:$0xff] }
 0x45d   : > { %3097 = vpow2.f32 %v1589_v37  ;;  %2821 = vmatmul.mubr.bf16.gmra.mxu1 %v1805_v4 }
 0x45e   : > { %v3086_v38 = vpop.eup %3085  ;;  %3099 = vpow2.f32 %v1461_v12  ;;  %v3832_v9 = vpop.permute.xlu0 %1743  ;;  %v1602_v12 = vld [vmem:[#allocation4 + $0x48] sm:$0xff] }
 0x45f   : > { %1635 = vadd.xlane.f32.xlu1 %v3080_v62  ;;  %v1806_v50 = vpack.c.bf16 %v3084_v51, %v3086_v38  ;;  %v3088_v58 = vpop.eup %3087  ;;  %3101 = vpow2.f32 %v1463_v41  ;;  %v1618_v35 = vmul.f32 %v3781_v21, %v1602_v12 }
 0x460   : > { %v3830_v59 = vpop.permute.xlu1 %1718 }
 0x461   : > { %2824 = vmatprep.mubr.bf16.mxu1 %v1806_v50 }
 0x462   : > { %v3090_v39 = vpop.eup %3089  ;;  %v3836_v31 = vpop.permute.xlu0 %1733 }
 0x463   : > { %1647 = vadd.xlane.f32.xlu1 %v3088_v58  ;;  %1645 = vadd.xlane.f32.xlu0 %v3090_v39  ;;  %v1807_v6 = vpack.c.bf16 %v3088_v58, %v3090_v39  ;;  %v3092_v7 = vpop.eup %3091  ;;  %v1598_v58 = vld [vmem:[#allocation4 + $0x28] sm:$0xff] }
 0x464   : > { %v3834_v23 = vpop.permute.xlu1 %1728  ;;  %v1614_v19 = vmul.f32 %v3769_v5, %v1598_v58 }
 0x465   : > { %2825 = vmatmul.mubr.bf16.gmra.mxu1 %v1807_v6 }
 0x466   : > { %v3094_v49 = vpop.eup %3093  ;;  %v3840_v44 = vpop.permute.xlu0 %1763 }
 0x467   : > { %1643 = vadd.xlane.f32.xlu1 %v3084_v51  ;;  %1641 = vadd.xlane.f32.xlu0 %v3086_v38  ;;  %v1808_v63 = vpack.c.bf16 %v3092_v7, %v3094_v49  ;;  %v3096_v3 = vpop.eup %3095  ;;  %v1616_v38 = vmul.f32 %v3761_v14, %v1600_v13  ;;  %v1601_v14 = vld [vmem:[#allocation4 + $0x40] sm:$0xff] }
 0x468   : > { %v3838_v53 = vpop.permute.xlu1 %1738  ;;  %v1617_v5 = vmul.f32 %v3790_v24, %v1601_v14  ;;  %v1606_v24 = vld [vmem:[#allocation4 + $0x68] sm:$0xff] }
 0x469   : > { %2828 = vmatprep.mubr.bf16.mxu1 %v1808_v63 }
 0x46a   : > { %v3098_v40 = vpop.eup %3097  ;;  %v3844_v26 = vpop.permute.xlu0 %1753 }
 0x46b   : > { %1655 = vadd.xlane.f32.xlu1 %v3096_v3  ;;  %1653 = vadd.xlane.f32.xlu0 %v3098_v40  ;;  %v1809_v10 = vpack.c.bf16 %v3096_v3, %v3098_v40  ;;  %v3818_v11 = vpop.eup %3099 }
 0x46c   : > { %v3821_v15 = vpop.eup %3101  ;;  %v3842_v28 = vpop.permute.xlu1 %1758 }
 0x46d   : > { %2829 = vmatmul.mubr.bf16.gmra.mxu1 %v1809_v10 }
 0x46e   : > { %v3848_v48 = vpop.permute.xlu0 %1773 }
 0x46f   : > { %1651 = vadd.xlane.f32.xlu1 %v3092_v7  ;;  %1649 = vadd.xlane.f32.xlu0 %v3094_v49  ;;  %v1603_v7 = vld [vmem:[#allocation4 + $0x50] sm:$0xff]  ;;  %v1604_v49 = vld [vmem:[#allocation4 + $0x58] sm:$0xff] }
 0x470   : > { %v3846_v32 = vpop.permute.xlu1 %1748  ;;  %v1619_v18 = vmul.f32 %v3784_v22, %v1603_v7  ;;  %v1620_v3 = vmul.f32 %v3775_v20, %v1604_v49  ;;  %v1608_v22 = vld [vmem:[#allocation4 + $0x78] sm:$0xff]  ;;  %v1697_v7 = vld [vmem:[#allocation5 + $0x48] sm:$0xff] }
 0x471   : > { %v1624_v30 = vmul.f32 %v3821_v15, %v1608_v22 }
 0x474   : > { %v3850_v42 = vpop.permute.xlu1 %1768 }
 0x480   : > { %1778 = vperm.xlu1 %3006, %v3818_v11  }
 0x485   : > { %1783 = vperm.xlu0 %3005, %v3821_v15   ;;  %v1692_v15 = vld [vmem:[#allocation5 + $0x58] sm:$0xff] }
 0x4ca   : > { %v1630_v55 = vpop.xlane.xlu0 %1629 }
 0x4cb   : > { %v1659_v56 = vadd.f32 %v1630_v55, %v1611_v43 }
 0x4cc   : > { %v1626_v47 = vpop.xlane.xlu1 %1625 }
 0x4cd   : > { %1676 = vst.msk [vmem:[#allocation4 + $0x10] sm:$0xff] %vm1673_vm1, %v1659_v56  ;;  %v1657_v46 = vadd.f32 %v1626_v47, %v1609_v57  ;;  %v1607_v56 = vld [vmem:[#allocation4 + $0x70] sm:$0xff] }
 0x4ce   : > { %v1623_v47 = vmul.f32 %v3818_v11, %v1607_v56  ;;  %v1699_v56 = vld [vmem:[#allocation5 + $0x20] sm:$0xff] }
 0x4cf   : > { %1674 = vst.msk [vmem:[#allocation4] sm:$0xff] %vm1673_vm1, %v1657_v46 }
 0x4d0   : > { %v1632_v62 = vpop.xlane.xlu1 %1631 }
 0x4d1   : > { %v1660_v36 = vadd.f32 %v1632_v62, %v1612_v60  ;;  %v1605_v60 = vld [vmem:[#allocation4 + $0x60] sm:$0xff] }
 0x4d2   : > { %v1628_v52 = vpop.xlane.xlu0 %1627 }
 0x4d3   : > { %1677 = vst.msk [vmem:[#allocation4 + $0x18] sm:$0xff] %vm1673_vm1, %v1660_v36  ;;  %v1658_v17 = vadd.f32 %v1628_v52, %v1610_v0  ;;  %v1621_v36 = vmul.f32 %v3793_v25, %v1605_v60  ;;  %v1622_v0 = vmul.f32 %v3787_v27, %v1606_v24  ;;  %v1691_v25 = vld [vmem:[#allocation5] sm:$0xff]  ;;  %v1789_v27 = vmul.f32 %v3828_v54, %v1693_v2 }
 0x4d5   : > { %1675 = vst.msk [vmem:[#allocation4 + $0x8] sm:$0xff] %vm1673_vm1, %v1658_v17 }
 0x4d8   : > { %v1638_v45 = vpop.xlane.xlu0 %1637 }
 0x4d9   : > { %v1663_v37 = vadd.f32 %v1638_v45, %v1615_v61  ;;  %v1690_v61 = vld [vmem:[#allocation5 + $0x30] sm:$0xff]  ;;  %v1788_v45 = vmul.f32 %v3830_v59, %v1692_v15  ;;  %v1696_v59 = vld [vmem:[#allocation5 + $0x8] sm:$0xff] }
 0x4db   : > { %1680 = vst.msk [vmem:[#allocation4 + $0x30] sm:$0xff] %vm1673_vm1, %v1663_v37 }
 0x4dc   : > { %v1634_v4 = vpop.xlane.xlu0 %1633 }
 0x4dd   : > { %v1661_v51 = vadd.f32 %v1634_v4, %v1613_v8  ;;  %v1786_v8 = vmul.f32 %v3824_v16, %v1690_v61  ;;  %v1792_v16 = vmul.f32 %v3838_v53, %v1696_v59 }
 0x4df   : > { %1678 = vst.msk [vmem:[#allocation4 + $0x20] sm:$0xff] %vm1673_vm1, %v1661_v51 }
 0x4e4   : > { %v1640_v50 = vpop.xlane.xlu1 %1639 }
 0x4e5   : > { %v1664_v39 = vadd.f32 %v1640_v50, %v1616_v38  ;;  %v1787_v50 = vmul.f32 %v3826_v29, %v1691_v25 }
 0x4e7   : > { %1681 = vst.msk [vmem:[#allocation4 + $0x38] sm:$0xff] %vm1673_vm1, %v1664_v39 }
 0x4e8   : > { %v1636_v6 = vpop.xlane.xlu1 %1635 }
 0x4e9   : > { %v1662_v63 = vadd.f32 %v1636_v6, %v1614_v19  ;;  %v1694_v6 = vld [vmem:[#allocation5 + $0x50] sm:$0xff] }
 0x4eb   : > { %1679 = vst.msk [vmem:[#allocation4 + $0x28] sm:$0xff] %vm1673_vm1, %v1662_v63  ;;  %v1790_v63 = vmul.f32 %v3834_v23, %v1694_v6  ;;  %v1701_v23 = vld [vmem:[#allocation5 + $0x38] sm:$0xff] }
 0x4ec   : > { %v1646_v40 = vpop.xlane.xlu0 %1645  ;;  %v1648_v10 = vpop.xlane.xlu1 %1647 }
 0x4ed   : > { %v1667_v41 = vadd.f32 %v1646_v40, %v1619_v18  ;;  %v1668_v34 = vadd.f32 %v1648_v10, %v1620_v3  ;;  %v1695_v18 = vld [vmem:[#allocation5 + $0x68] sm:$0xff]  ;;  %v1793_v40 = vmul.f32 %v3832_v9, %v1697_v7  ;;  %v1700_v10 = vld [vmem:[#allocation5 + $0x10] sm:$0xff] }
 0x4ee   : > { %v1791_v12 = vmul.f32 %v3836_v31, %v1695_v18  ;;  %v1796_v53 = vmul.f32 %v3842_v28, %v1700_v10 }
 0x4ef   : > { %1684 = vst.msk [vmem:[#allocation4 + $0x50] sm:$0xff] %vm1673_vm1, %v1667_v41  ;;  %1685 = vst.msk [vmem:[#allocation4 + $0x58] sm:$0xff] %vm1673_vm1, %v1668_v34  ;;  %v1698_v34 = vld [vmem:[#allocation5 + $0x40] sm:$0xff] }
 0x4f0   : > { %v1642_v43 = vpop.xlane.xlu0 %1641  ;;  %v1644_v55 = vpop.xlane.xlu1 %1643 }
 0x4f1   : > { %v1665_v57 = vadd.f32 %v1642_v43, %v1617_v5  ;;  %v1666_v20 = vadd.f32 %v1644_v55, %v1618_v35  ;;  %v1794_v55 = vmul.f32 %v3846_v32, %v1698_v34 }
 0x4f3   : > { %1682 = vst.msk [vmem:[#allocation4 + $0x40] sm:$0xff] %vm1673_vm1, %v1665_v57  ;;  %1683 = vst.msk [vmem:[#allocation4 + $0x48] sm:$0xff] %vm1673_vm1, %v1666_v20  ;;  %v1797_v57 = vmul.f32 %v3840_v44, %v1701_v23  ;;  %v1704_v20 = vld [vmem:[#allocation5 + $0x78] sm:$0xff] }
 0x4f4   : > { %v1654_v46 = vpop.xlane.xlu0 %1653  ;;  %v1656_v33 = vpop.xlane.xlu1 %1655 }
 0x4f5   : > { %v1671_v62 = vadd.f32 %v1654_v46, %v1623_v47  ;;  %v1672_v21 = vadd.f32 %v1656_v33, %v1624_v30  ;;  %v1795_v46 = vmul.f32 %v3844_v26, %v1699_v56  ;;  %v1702_v33 = vld [vmem:[#allocation5 + $0x60] sm:$0xff] }
 0x4f7   : > { %1688 = vst.msk [vmem:[#allocation4 + $0x70] sm:$0xff] %vm1673_vm1, %v1671_v62  ;;  %1689 = vst.msk [vmem:[#allocation4 + $0x78] sm:$0xff] %vm1673_vm1, %v1672_v21  ;;  %v1705_v62 = vld [vmem:[#allocation5 + $0x28] sm:$0xff] }
 0x4f8   : > { %v1650_v52 = vpop.xlane.xlu0 %1649  ;;  %v1652_v17 = vpop.xlane.xlu1 %1651 }
 0x4f9   : > { %v1669_v1 = vadd.f32 %v1650_v52, %v1621_v36  ;;  %v1670_v11 = vadd.f32 %v1652_v17, %v1622_v0  ;;  %v1798_v0 = vmul.f32 %v3850_v42, %v1702_v33  ;;  %v1703_v52 = vld [vmem:[#allocation5 + $0x70] sm:$0xff] }
 0x4fa   : > { %v1799_v15 = vmul.f32 %v3848_v48, %v1703_v52 }
 0x4fb   : > { %1686 = vst.msk [vmem:[#allocation4 + $0x60] sm:$0xff] %vm1673_vm1, %v1669_v1  ;;  %1687 = vst.msk [vmem:[#allocation4 + $0x68] sm:$0xff] %vm1673_vm1, %v1670_v11 }
 0x4fc   : > { %v1779_v47 = vpop.permute.xlu1 %1778 }
 0x4fd   : > { %v1800_v24 = vmul.f32 %v1779_v47, %v1704_v20 }
 0x500   : > { %v1784_v21 = vpop.permute.xlu0 %1783 }
 0x501   : > { %v1801_v1 = vmul.f32 %v1784_v21, %v1705_v62 }
 0x50c   : > { %v2818_v37 = vpop.f32.mrf.mxu1 }
 0x50d   : > { %v1909_v4 = vadd.f32 %v2818_v37, %v1788_v45 }
 0x50e   : > { %v1844_v51 = vpop.f32.mrf.mxu1 }
 0x50f   : > { %1925 = vst [vmem:[#allocation5 + $0x58] sm:$0xff] %v1909_v4  ;;  %v1907_v13 = vadd.f32 %v1844_v51, %v1786_v8 }
 0x510   : > { %v2819_v38 = vpop.f32.mrf.mxu1 }
 0x511   : > { %1923 = vst [vmem:[#allocation5 + $0x30] sm:$0xff] %v1907_v13  ;;  %v1910_v58 = vadd.f32 %v2819_v38, %v1789_v27 }
 0x512   : > { %v1847_v39 = vpop.f32.mrf.mxu1 }
 0x513   : > { %1926 = vst [vmem:[#allocation5 + $0x18] sm:$0xff] %v1910_v58  ;;  %v1908_v19 = vadd.f32 %v1847_v39, %v1787_v50 }
 0x515   : > { %1924 = vst [vmem:[#allocation5] sm:$0xff] %v1908_v19 }
 0x51d   : > { %v2822_v49 = vpop.f32.mrf.mxu1 }
 0x51e   : > { %v1913_v54 = vadd.f32 %v2822_v49, %v1792_v16 }
 0x51f   : > { %v1860_v3 = vpop.f32.mrf.mxu1 }
 0x520   : > { %1929 = vst [vmem:[#allocation5 + $0x8] sm:$0xff] %v1913_v54  ;;  %v1911_v29 = vadd.f32 %v1860_v3, %v1790_v63 }
 0x521   : > { %v2823_v14 = vpop.f32.mrf.mxu1 }
 0x522   : > { %1927 = vst [vmem:[#allocation5 + $0x50] sm:$0xff] %v1911_v29  ;;  %v1914_v41 = vadd.f32 %v2823_v14, %v1793_v40 }
 0x523   : > { %v1863_v5 = vpop.f32.mrf.mxu1 }
 0x524   : > { %1930 = vst [vmem:[#allocation5 + $0x48] sm:$0xff] %v1914_v41  ;;  %v1912_v35 = vadd.f32 %v1863_v5, %v1791_v12 }
 0x525   : > { %v2826_v43 = vpop.f32.mrf.mxu1 }
 0x526   : > { %1928 = vst [vmem:[#allocation5 + $0x68] sm:$0xff] %v1912_v35  ;;  %v1917_v9 = vadd.f32 %v2826_v43, %v1796_v53 }
 0x527   : > { %v1876_v22 = vpop.f32.mrf.mxu1 }
 0x528   : > { %1933 = vst [vmem:[#allocation5 + $0x10] sm:$0xff] %v1917_v9  ;;  %v1915_v31 = vadd.f32 %v1876_v22, %v1794_v55 }
 0x529   : > { %v2827_v30 = vpop.f32.mrf.mxu1 }
 0x52a   : > { %1931 = vst [vmem:[#allocation5 + $0x40] sm:$0xff] %v1915_v31  ;;  %v1918_v28 = vadd.f32 %v2827_v30, %v1797_v57 }
 0x52b   : > { %v1879_v60 = vpop.f32.mrf.mxu1 }
 0x52c   : > { %1934 = vst [vmem:[#allocation5 + $0x38] sm:$0xff] %v1918_v28  ;;  %v1916_v32 = vadd.f32 %v1879_v60, %v1795_v46 }
 0x52d   : > { %v2830_v36 = vpop.f32.mrf.mxu1 }
 0x52e   : > { %1932 = vst [vmem:[#allocation5 + $0x20] sm:$0xff] %v1916_v32  ;;  %v1921_v44 = vadd.f32 %v2830_v36, %v1800_v24 }
 0x52f   : > { %v1892_v17 = vpop.f32.mrf.mxu1 }
 0x530   : > { %1937 = vst [vmem:[#allocation5 + $0x78] sm:$0xff] %v1921_v44  ;;  %v1919_v11 = vadd.f32 %v1892_v17, %v1798_v0 }
 0x531   : > { %v2831_v26 = vpop.f32.mrf.mxu1 }
 0x532   : > { %1935 = vst [vmem:[#allocation5 + $0x60] sm:$0xff] %v1919_v11  ;;  %v1922_v61 = vadd.f32 %v2831_v26, %v1801_v1  ;;  %1958 = sbr.rel (%p2497_p3) target bundleno = 1709 (0x6ad), region = 60 }
 0x533   : > { %v1895_v45 = vpop.f32.mrf.mxu1 }
 0x534   : > { %1938 = vst [vmem:[#allocation5 + $0x28] sm:$0xff] %v1922_v61  ;;  %v1920_v2 = vadd.f32 %v1895_v45, %v1799_v15 }
 0x536   : > { %1936 = vst [vmem:[#allocation5 + $0x70] sm:$0xff] %v1920_v2 }
 0x537   : > { %v1967_v42 = vld [vmem:[#allocation4 + $0x40] sm:$0xff]  ;;  %v1968_v8 = vld [vmem:[#allocation4 + $0x48] sm:$0xff]  ;;  %v3258_v4 = vmov 0   ;;  %v1962_v48 = vld [vmem:[#allocation4 + $0x18] sm:$0xff] }
 0x538   : > { %v1959_v37 = vld [vmem:[#allocation4] sm:$0xff]  ;;  %3104 = vset.pattern.permute.xlu1 %v3258_v4  ;;  %3103 = vset.pattern.permute.xlu0 %v3258_v4  ;;  %3113 = vrcp.f32 %v1967_v42  ;;  %v1960_v25 = vld [vmem:[#allocation4 + $0x8] sm:$0xff]  ;;  %v1961_v51 = vld [vmem:[#allocation4 + $0x10] sm:$0xff] }
 0x539   : > { %3115 = vrcp.f32 %v1959_v37  ;;  %v3105_v27 = vld [vmem:[%s4017_s6 + $0x38] sm:$0xff]   ;;  %v3106_v13 = vld [vmem:[%s4017_s6 + $0x30] sm:$0xff]   ;;  %v3107_v58 = vld [vmem:[%s4017_s6 + $0x28] sm:$0xff]  }
 0x53a   : > { %3117 = vrcp.f32 %v1968_v8  ;;  %v1970_v38 = vld [vmem:[#allocation4 + $0x58] sm:$0xff]  ;;  %2832 = vmatprep.subr.bf16.mxu0 %v3105_v27  ;;  %2880 = vmatprep.subr.bf16.mxu1 %v3105_v27  ;;  %v1969_v50 = vld [vmem:[#allocation4 + $0x50] sm:$0xff]  ;;  %v1964_v39 = vld [vmem:[#allocation4 + $0x28] sm:$0xff] }
 0x53b   : > { %3119 = vrcp.f32 %v1960_v25  ;;  %2833 = vmatpush3.bf16.msra.mxu0 %v3105_v27  ;;  %2888 = vmatpush3.bf16.msra.mxu1 %v3105_v27  ;;  %v1963_v19 = vld [vmem:[#allocation4 + $0x20] sm:$0xff]  ;;  %v1972_v49 = vld [vmem:[#allocation4 + $0x68] sm:$0xff]  ;;  %v3109_v18 = vld [vmem:[%s4017_s6 + $0x18] sm:$0xff]  }
 0x53c   : > { %3121 = vrcp.f32 %v1962_v48  ;;  %2834 = vmatprep.subr.bf16.mxu0 %v3106_v13  ;;  %2881 = vmatprep.subr.bf16.mxu1 %v3106_v13  ;;  %v3108_v6 = vld [vmem:[%s4017_s6 + $0x20] sm:$0xff]   ;;  %v1966_v40 = vld [vmem:[#allocation4 + $0x38] sm:$0xff]  ;;  %v1965_v10 = vld [vmem:[#allocation4 + $0x30] sm:$0xff] }
 0x53d   : > { %3123 = vrcp.f32 %v1961_v51  ;;  %v1971_v54 = vld [vmem:[#allocation4 + $0x60] sm:$0xff]  ;;  %v3110_v14 = vld [vmem:[%s4017_s6 + $0x10] sm:$0xff]   ;;  %v1974_v41 = vld [vmem:[#allocation4 + $0x78] sm:$0xff] }
 0x53e   : > { %3125 = vrcp.f32 %v1970_v38  ;;  %v1973_v5 = vld [vmem:[#allocation4 + $0x70] sm:$0xff]  ;;  %v3111_v53 = vld [vmem:[%s4017_s6 + $0x8] sm:$0xff]   ;;  %v3112_v43 = vld [vmem:[%s4017_s6] sm:$0xff]  }
 0x53f   : > { %3127 = vrcp.f32 %v1969_v50  ;;  %2835 = vmatpush3.bf16.msra.mxu0 %v3106_v13  ;;  %2889 = vmatpush3.bf16.msra.mxu1 %v3106_v13  ;;  %v1999_v30 = vld [vmem:[#allocation5 + $0x40] sm:$0xff]  ;;  %v1991_v28 = vld [vmem:[#allocation5 + $0x30] sm:$0xff]  ;;  %v1994_v0 = vld [vmem:[#allocation5 + $0x18] sm:$0xff] }
 0x540   : > { %2836 = vmatprep.subr.bf16.mxu0 %v3107_v58  ;;  %2882 = vmatprep.subr.bf16.mxu1 %v3107_v58  ;;  %3129 = vrcp.f32 %v1964_v39  ;;  %v2000_v46 = vld [vmem:[#allocation5 + $0x20] sm:$0xff]  ;;  %v1993_v44 = vld [vmem:[#allocation5 + $0x58] sm:$0xff]  ;;  %v2001_v45 = vld [vmem:[#allocation5 + $0x10] sm:$0xff] }
 0x541   : > { %3131 = vrcp.f32 %v1963_v19  ;;  %v1992_v33 = vld [vmem:[#allocation5] sm:$0xff]  ;;  %v2002_v61 = vld [vmem:[#allocation5 + $0x38] sm:$0xff]  ;;  %v1996_v25 = vld [vmem:[#allocation5 + $0x68] sm:$0xff] }
 0x542   : > { %3133 = vrcp.f32 %v1972_v49  ;;  %v1995_v48 = vld [vmem:[#allocation5 + $0x50] sm:$0xff]  ;;  %v2003_v39 = vld [vmem:[#allocation5 + $0x60] sm:$0xff]  ;;  %v1998_v49 = vld [vmem:[#allocation5 + $0x48] sm:$0xff] }
 0x543   : > { %2837 = vmatpush3.bf16.msra.mxu0 %v3107_v58  ;;  %2890 = vmatpush3.bf16.msra.mxu1 %v3107_v58  ;;  %3135 = vrcp.f32 %v1971_v54  ;;  %v2004_v58 = vld [vmem:[#allocation5 + $0x70] sm:$0xff] }
 0x544   : > { %2838 = vmatprep.subr.bf16.mxu0 %v3108_v6  ;;  %2883 = vmatprep.subr.bf16.mxu1 %v3108_v6  ;;  %3137 = vrcp.f32 %v1966_v40 }
 0x545   : > { %v3114_v59 = vpop.eup %3113  ;;  %3139 = vrcp.f32 %v1965_v10  ;;  %v2006_v10 = vld [vmem:[#allocation5 + $0x28] sm:$0xff] }
 0x546   : > { %v3116_v16 = vpop.eup %3115  ;;  %2049 = vperm.xlu1 %3104, %v3114_v59   ;;  %3141 = vrcp.f32 %v1974_v41 }
 0x547   : > { %v3118_v7 = vpop.eup %3117  ;;  %2009 = vperm.xlu0 %3103, %v3116_v16   ;;  %2839 = vmatpush3.bf16.msra.mxu0 %v3108_v6  ;;  %3143 = vrcp.f32 %v1973_v5 }
 0x548   : > { %v3120_v63 = vpop.eup %3119  ;;  %2891 = vmatpush3.bf16.msra.mxu1 %v3108_v6  ;;  %2840 = vmatprep.subr.bf16.mxu0 %v3109_v18 }
 0x549   : > { %v3122_v3 = vpop.eup %3121  ;;  %2884 = vmatprep.subr.bf16.mxu1 %v3109_v18 }
 0x54a   : > { %2054 = vperm.xlu1 %3104, %v3118_v7   ;;  %v3124_v29 = vpop.eup %3123 }
 0x54b   : > { %2014 = vperm.xlu0 %3103, %v3120_v63   ;;  %v3126_v12 = vpop.eup %3125  ;;  %2841 = vmatpush3.bf16.msra.mxu0 %v3109_v18  ;;  %v1997_v63 = vld [vmem:[#allocation5 + $0x8] sm:$0xff] }
 0x54c   : > { %v3128_v34 = vpop.eup %3127  ;;  %2892 = vmatpush3.bf16.msra.mxu1 %v3109_v18  ;;  %2842 = vmatprep.subr.bf16.mxu0 %v3110_v14 }
 0x54d   : > { %2885 = vmatprep.subr.bf16.mxu1 %v3110_v14  ;;  %v3130_v35 = vpop.eup %3129 }
 0x54e   : > { %2024 = vperm.xlu1 %3104, %v3122_v3   ;;  %v3132_v23 = vpop.eup %3131 }
 0x54f   : > { %2019 = vperm.xlu0 %3103, %v3124_v29   ;;  %2843 = vmatpush3.bf16.msra.mxu0 %v3110_v14  ;;  %v3134_v55 = vpop.eup %3133 }
 0x550   : > { %2893 = vmatpush3.bf16.msra.mxu1 %v3110_v14  ;;  %2844 = vmatprep.subr.bf16.mxu0 %v3111_v53  ;;  %v3136_v9 = vpop.eup %3135  ;;  %v2005_v14 = vld [vmem:[#allocation5 + $0x78] sm:$0xff] }
 0x551   : > { %2886 = vmatprep.subr.bf16.mxu1 %v3111_v53  ;;  %v3138_v56 = vpop.eup %3137 }
 0x552   : > { %2064 = vperm.xlu1 %3104, %v3126_v12   ;;  %v3140_v22 = vpop.eup %3139 }
 0x553   : > { %2059 = vperm.xlu0 %3103, %v3128_v34   ;;  %2845 = vmatpush3.bf16.msra.mxu0 %v3111_v53  ;;  %v3142_v57 = vpop.eup %3141 }
 0x554   : > { %2894 = vmatpush3.bf16.msra.mxu1 %v3111_v53  ;;  %2846 = vmatprep.subr.bf16.mxu0 %v3112_v43  ;;  %v3144_v31 = vpop.eup %3143 }
 0x555   : > { %2887 = vmatprep.subr.bf16.mxu1 %v3112_v43 }
 0x556   : > { %2034 = vperm.xlu1 %3104, %v3130_v35  }
 0x557   : > { %2029 = vperm.xlu0 %3103, %v3132_v23   ;;  %2847 = vmatpush3.bf16.msra.mxu0 %v3112_v43  ;;  %v2498_v23 = vld [vmem:[%s4018_s7] ss:$0 sm:$0xff] }
 0x558   : > { %2895 = vmatpush3.bf16.msra.mxu1 %v3112_v43 }
 0x55a   : > { %2074 = vperm.xlu1 %3104, %v3134_v55  }
 0x55b   : > { %2069 = vperm.xlu0 %3103, %v3136_v9  }
 0x55e   : > { %2044 = vperm.xlu1 %3104, %v3138_v56  }
 0x55f   : > { %2039 = vperm.xlu0 %3103, %v3140_v22  }
 0x562   : > { %2084 = vperm.xlu1 %3104, %v3142_v57  }
 0x563   : > { %2079 = vperm.xlu0 %3103, %v3144_v31  }
 0x5c1   : > { %v2050_v20 = vpop.permute.xlu1 %2049 }
 0x5c2   : > { %v2010_v47 = vpop.permute.xlu0 %2009  ;;  %v2095_v24 = vmul.f32 %v2050_v20, %v1999_v30 }
 0x5c3   : > { %v2087_v21 = vmul.f32 %v2010_v47, %v1991_v28 }
 0x5c5   : > { %v2055_v60 = vpop.permute.xlu1 %2054 }
 0x5c6   : > { %v2096_v32 = vmul.f32 %v2055_v60, %v2000_v46  ;;  %v2015_v62 = vpop.permute.xlu0 %2014 }
 0x5c7   : > { %v2088_v36 = vmul.f32 %v2015_v62, %v1992_v33 }
 0x5c8   : > { %v2107_v52 = vpack.c.bf16 %v2096_v32, %v2095_v24 }
 0x5c9   : > { %v2025_v17 = vpop.permute.xlu1 %2024  ;;  %v2103_v1 = vpack.c.bf16 %v2088_v36, %v2087_v21 }
 0x5ca   : > { %v2090_v11 = vmul.f32 %v2025_v17, %v1994_v0  ;;  %v2020_v26 = vpop.permute.xlu0 %2019  ;;  %2856 = vmatprep.mubr.bf16.mxu1 %v2107_v52 }
 0x5cb   : > { %v2089_v15 = vmul.f32 %v2020_v26, %v1993_v44  ;;  %2848 = vmatprep.mubr.bf16.mxu0 %v2103_v1 }
 0x5cd   : > { %v2104_v2 = vpack.c.bf16 %v2090_v11, %v2089_v15  ;;  %v2065_v42 = vpop.permute.xlu1 %2064 }
 0x5ce   : > { %v2098_v37 = vmul.f32 %v2065_v42, %v2002_v61  ;;  %v2060_v8 = vpop.permute.xlu0 %2059 }
 0x5cf   : > { %v2097_v4 = vmul.f32 %v2060_v8, %v2001_v45  ;;  %2849 = vmatmul.mubr.bf16.vlgmr.msra.gmra.mxu0 %v2104_v2 }
 0x5d1   : > { %v2108_v51 = vpack.c.bf16 %v2098_v37, %v2097_v4  ;;  %v2035_v27 = vpop.permute.xlu1 %2034 }
 0x5d2   : > { %v2092_v13 = vmul.f32 %v2035_v27, %v1996_v25  ;;  %v2030_v38 = vpop.permute.xlu0 %2029 }
 0x5d3   : > { %v2091_v50 = vmul.f32 %v2030_v38, %v1995_v48  ;;  %2857 = vmatmul.mubr.bf16.vlgmr.msra.gmra.mxu1 %v2108_v51 }
 0x5d5   : > { %v2105_v19 = vpack.c.bf16 %v2092_v13, %v2091_v50  ;;  %v2075_v59 = vpop.permute.xlu1 %2074 }
 0x5d6   : > { %v2100_v6 = vmul.f32 %v2075_v59, %v2004_v58  ;;  %v2070_v16 = vpop.permute.xlu0 %2069 }
 0x5d7   : > { %v2099_v7 = vmul.f32 %v2070_v16, %v2003_v39  ;;  %2852 = vmatprep.mubr.bf16.mxu0 %v2105_v19 }
 0x5d9   : > { %v2109_v54 = vpack.c.bf16 %v2100_v6, %v2099_v7  ;;  %v2045_v18 = vpop.permute.xlu1 %2044 }
 0x5da   : > { %v2094_v3 = vmul.f32 %v2045_v18, %v1998_v49  ;;  %v2040_v40 = vpop.permute.xlu0 %2039 }
 0x5db   : > { %v2093_v29 = vmul.f32 %v2040_v40, %v1997_v63  ;;  %2860 = vmatprep.mubr.bf16.mxu1 %v2109_v54 }
 0x5dd   : > { %v2106_v12 = vpack.c.bf16 %v2094_v3, %v2093_v29  ;;  %v2085_v41 = vpop.permute.xlu1 %2084 }
 0x5de   : > { %v2102_v34 = vmul.f32 %v2085_v41, %v2006_v10  ;;  %v2080_v5 = vpop.permute.xlu0 %2079 }
 0x5df   : > { %v2101_v53 = vmul.f32 %v2080_v5, %v2005_v14  ;;  %2853 = vmatmul.mubr.bf16.gmra.mxu0 %v2106_v12 }
 0x5e1   : > { %v2110_v35 = vpack.c.bf16 %v2102_v34, %v2101_v53 }
 0x5e3   : > { %2861 = vmatmul.mubr.bf16.gmra.mxu1 %v2110_v35 }
 0x68f   : > { %v2850_v43 = vpop.f32.mrf.mxu0 }
 0x690   : > { %v2225_v55 = vadd.f32 %v2850_v43, %v2498_v23 }
 0x691   : > { %v2216_v9 = vpop.f32.mrf.mxu0 }
 0x692   : > { %2281 = vst [vmem:[%s3413_s27 + $0x10] sm:$0xff] %v2225_v55  ;;  %v2217_v56 = vadd.f32 %v2498_v23, %v2216_v9 }
 0x693   : > { %v2851_v22 = vpop.f32.mrf.mxu0  ;;  %v2858_v57 = vpop.f32.mrf.mxu1 }
 0x694   : > { %2279 = vst [vmem:[%s3413_s27] sm:$0xff] %v2217_v56  ;;  %v2228_v31 = vadd.f32 %v2851_v22, %v2498_v23  ;;  %v2257_v20 = vadd.f32 %v2858_v57, %v2498_v23 }
 0x695   : > { %v2219_v47 = vpop.f32.mrf.mxu0  ;;  %v2248_v30 = vpop.f32.mrf.mxu1 }
 0x696   : > { %2282 = vst [vmem:[%s3413_s27 + $0x18] sm:$0xff] %v2228_v31  ;;  %2289 = vst [vmem:[%s3413_s27 + $0x50] sm:$0xff] %v2257_v20  ;;  %v2220_v46 = vadd.f32 %v2498_v23, %v2219_v47  ;;  %v2249_v28 = vadd.f32 %v2498_v23, %v2248_v30 }
 0x697   : > { %v2859_v33 = vpop.f32.mrf.mxu1 }
 0x698   : > { %2280 = vst [vmem:[%s3413_s27 + $0x8] sm:$0xff] %v2220_v46  ;;  %2287 = vst [vmem:[%s3413_s27 + $0x40] sm:$0xff] %v2249_v28  ;;  %v2260_v60 = vadd.f32 %v2859_v33, %v2498_v23 }
 0x699   : > { %v2251_v24 = vpop.f32.mrf.mxu1 }
 0x69a   : > { %2290 = vst [vmem:[%s3413_s27 + $0x58] sm:$0xff] %v2260_v60  ;;  %v2252_v32 = vadd.f32 %v2498_v23, %v2251_v24 }
 0x69c   : > { %2288 = vst [vmem:[%s3413_s27 + $0x48] sm:$0xff] %v2252_v32 }
 0x69f   : > { %v2854_v62 = vpop.f32.mrf.mxu0 }
 0x6a0   : > { %v2241_v21 = vadd.f32 %v2854_v62, %v2498_v23 }
 0x6a1   : > { %v2232_v36 = vpop.f32.mrf.mxu0 }
 0x6a2   : > { %2285 = vst [vmem:[%s3413_s27 + $0x30] sm:$0xff] %v2241_v21  ;;  %v2233_v0 = vadd.f32 %v2498_v23, %v2232_v36 }
 0x6a3   : > { %v2855_v44 = vpop.f32.mrf.mxu0  ;;  %v2862_v52 = vpop.f32.mrf.mxu1 }
 0x6a4   : > { %2283 = vst [vmem:[%s3413_s27 + $0x20] sm:$0xff] %v2233_v0  ;;  %v2244_v17 = vadd.f32 %v2855_v44, %v2498_v23  ;;  %v2273_v1 = vadd.f32 %v2862_v52, %v2498_v23 }
 0x6a5   : > { %v2235_v11 = vpop.f32.mrf.mxu0  ;;  %v2264_v26 = vpop.f32.mrf.mxu1 }
 0x6a6   : > { %2286 = vst [vmem:[%s3413_s27 + $0x38] sm:$0xff] %v2244_v17  ;;  %2293 = vst [vmem:[%s3413_s27 + $0x70] sm:$0xff] %v2273_v1  ;;  %v2236_v15 = vadd.f32 %v2498_v23, %v2235_v11  ;;  %v2265_v61 = vadd.f32 %v2498_v23, %v2264_v26 }
 0x6a7   : > { %v2863_v45 = vpop.f32.mrf.mxu1 }
 0x6a8   : > { %2284 = vst [vmem:[%s3413_s27 + $0x28] sm:$0xff] %v2236_v15  ;;  %2291 = vst [vmem:[%s3413_s27 + $0x60] sm:$0xff] %v2265_v61  ;;  %v2276_v2 = vadd.f32 %v2863_v45, %v2498_v23 }
 0x6a9   : > { %v2267_v42 = vpop.f32.mrf.mxu1 }
 0x6aa   : > { %2294 = vst [vmem:[%s3413_s27 + $0x78] sm:$0xff] %v2276_v2  ;;  %v2268_v37 = vadd.f32 %v2498_v23, %v2267_v42 }
 0x6ac   : > { %2292 = vst [vmem:[%s3413_s27 + $0x68] sm:$0xff] %v2268_v37 }
 0x6ad PF: > { %s2509_s30 = sshll.u32 %s3237_s10, 5  ;;  %s2311_s22 = sshll.u32 %s3413_s27, 4  ;;  %s3945_s22 = int_to_ptr.vmem [resolvable:$true] %s2311_s22 }
 0x6ae   : > { %s2308_s9 = sadd.s32 %s2509_s30, %s3394_s16  ;;  %s4041_s29 = sand.u32 1, %s3221_s28  }
 0x6af   : > { %s2510_s19 = sshll.u32 %s2308_s9, 7  ;;  %s3954_s17 = scalar_lea.sflag [#allocation7], %s4041_s29 }
 0x6b0   : > { %s3950_s13 = scalar_lea.hbm %s4019_s8, %s2510_s19  ;;  %s3145_s18 = scalar_lea.vmem %s3945_s22, 2048 }
 0x6b1   : > { %p3146_p4 = scmp.ne.s32.totalorder %s3945_s22, %s3145_s18  ;;  %s3259_s27 = smov [#allocation6]  }
 0x6b2   : > { %s3149_s10 = sshll.u32 %s3259_s27, 4  ;;  %s3150_s10 = int_to_ptr.vmem [resolvable:$false] %s3149_s10 }
 0x6b3   : > { %p3147_p5 = pnand %p3146_p4, %p3369_p6  ;;  %s3151_s16 = scalar_lea.vmem %s3150_s10, 4096 }
 0x6b4   : > { %p3152_p9 = scmp.lt.s32.totalorder %s3945_s22, %s3150_s10  ;;  %p3153_p10 = scmp.lt.s32.totalorder %s3151_s16, %s3145_s18 }
 0x6b5   : > { %p3148_p8 = pneg %p3147_p5 }
 0x6b6   : > { %p3154_p11 = por %p3153_p10, %p3152_p9 }
 0x6b8   : > { %p3155_p12 = pnand %p3154_p11, %p3148_p8 }
 0x6ba   : > { %3158 = shalt.err (!%p3155_p12)
}
 0x6bb   : > { %s3159_s21 = scalar_lea.hbm %s3950_s13, 2048  ;;  %s3163_s24 = scalar_lea.hbm %s4019_s8, 8192 }
 0x6bc   : > { %p3160_p13 = scmp.ne.s32.totalorder %s3950_s13, %s3159_s21  ;;  %p3164_p2 = scmp.lt.s32.totalorder %s3950_s13, %s4019_s8 }
 0x6bd   : > { %p3165_p3 = scmp.lt.s32.totalorder %s3163_s24, %s3159_s21 }
 0x6be   : > { %p3161_p0 = pnand %p3160_p13, %p3369_p6 }
 0x6bf   : > { %p3166_p4 = por %p3165_p3, %p3164_p2 }
 0x6c0   : > { %p3162_p1 = pneg %p3161_p0 }
 0x6c2   : > { %p3167_p5 = pnand %p3166_p4, %p3162_p1 }
 0x6c4   : > { %3170 = shalt.err (!%p3167_p5)
}
 0x6c5   : > { %s3260_s30 = smov 128   ;;  %s3261_s9 = smov 8  }
 0x6c6   : > { %2896 = dma.vmem_to_hbm [thread:$0]  (%p3369_p6), %s3945_s22, 2048, %s3950_s13, %s3954_s17, %s3260_s30, %s3260_s30, %s3261_s9  }
 0x6c7 PF: > { %s4042_s19 = sld [smem:[#allocation9_spill]]  ;;  %p2902_p8 = scmp.ge.s32.totalorder %s3253_s14, 2 }
 0x6c9   : > { %p2899_p9 = pnand %p2902_p8, %p3376_p7 }
 0x6cb   : > { %p2900_p10 = pneg %p2899_p9 }
 0x6cd   : > { %s2326_s11 = sand.u32 1, %s4042_s19  }
 0x6ce   : > { %s2327_s29 = scalar_lea.sflag [#allocation7], %s2326_s11 }
 0x6cf   : > { %3212 = dma.done.wait (%p2900_p10), %s2327_s29, 2048  }
 0x6d0   : > { %3214 = vsyncadd (%p2900_p10), %s2327_s29, 4294965248  ;;  %s21_s14 = sadd.s32 1, %s3253_s14   ;;  %s4044_s18 = sld [smem:[#allocation10_spill]] }
 0x6d1   : > { %p18_p11 = scmp.ge.s32.totalorder %s21_s14, 10   ;;  %s4045_s29 = sld [smem:[#allocation18_spill]] }
 0x6d2   : > { %s4046_s30 = sld [smem:[#allocation11_spill]]  ;;  %s4052_s27 = smov %s3221_s28 }
 0x6d3   : > { %s4047_s9 = sld [smem:[#allocation12_spill]]  ;;  %20 = sbr.rel (!%p18_p11) target bundleno = 6 (0x6), region = 98 }
 0x6d4   : > { %s4048_s10 = sld [smem:[#allocation13_spill]] }
 0x6d5   : > { %s4049_s11 = sld [smem:[#allocation14_spill]] }
 0x6d6   : > { %s4050_s12 = sld [smem:[#allocation15_spill]]  ;;  %s4053_s28 = smov %s4044_s18 }
 0x6d7   : > { %s4051_s13 = sld [smem:[#allocation17_spill]] }
 0x6d8   :  { %2332 = vsyncpa [#allocation7], 1 }
 0x6d9   :  { %2334 = vsyncpa [#allocation7 + $0x1], 1 }

</bundles_post_ra>
